<compile_context>
chip_gen: v7x
topology: tpu7x:2x2x1
jax: 0.10.0
libtpu: 0.0.40
codegen_flags: <defaults>
</compile_context>

<pallas_src>
import functools

import jax
import jax.numpy as jnp
from jax.experimental import pallas as pl
from jax.experimental.pallas import tpu as pltpu


def _round_up(v, m):
    return ((v + m - 1) // m) * m


# -----------------------------------------------------------------------------------
# Kernel A: GN layer 0 (in_channels -> hidden). Grid = (row tiles, contraction blocks).
# Emits [h0 | E_agg] in bf16 so layer 1 can fuse its self+edge matmul and reuse the
# same array for its adjacency contraction.
# -----------------------------------------------------------------------------------
def _gn0_kernel(xe_ref, xk_ref, adj_ref, wse_ref, wn_ref, bgb_ref, he_ref, acc_ref):
    k = pl.program_id(1)

    @pl.when(k == 0)
    def _():
        acc_ref[...] = jnp.zeros_like(acc_ref)

    # neighbor aggregation (reordered, in_ch < hidden):  acc += A_blk @ x_blk
    acc_ref[...] += jnp.dot(adj_ref[...], xk_ref[...],
                            preferred_element_type=jnp.float32)

    @pl.when(k == pl.num_programs(1) - 1)
    def _():
        in_ch = xk_ref.shape[1]
        hidden = wn_ref.shape[1]
        xe = xe_ref[...]                                    # (TM, in_ch+edge_dim) bf16
        # fused self + edge term:  [x | E_agg] @ [Ws0 ; We0]
        se = jnp.dot(xe, wse_ref[...], preferred_element_type=jnp.float32)
        nbr = jnp.dot(acc_ref[...].astype(jnp.bfloat16), wn_ref[...],
                      preferred_element_type=jnp.float32)

        bgb = bgb_ref[...]                                  # (3, hidden): b, gamma, beta
        out = se + nbr + bgb[0:1, :]
        mu = jnp.mean(out, axis=-1, keepdims=True)          # LayerNorm in f32 (VPU)
        var = jnp.mean(jnp.square(out - mu), axis=-1, keepdims=True)
        out = (out - mu) * jax.lax.rsqrt(var + 1e-5) * bgb[1:2, :] + bgb[2:3, :]
        h = jnp.maximum(out, 0.0)

        he_ref[:, :hidden] = h.astype(jnp.bfloat16)         # h0 (bf16)
        he_ref[:, hidden:] = xe[:, in_ch:]                  # carry E_agg (bf16) forward


# -----------------------------------------------------------------------------------
# Kernel B: GN layer 1 (hidden -> hidden) + MLP head + sigmoid.
# -----------------------------------------------------------------------------------
def _gn1_head_kernel(he_ref, hek_ref, adj_ref, wse_ref, wnp_ref, bgb_ref,
                     wh1_ref, hv_ref, o_ref, acc_ref):
    k = pl.program_id(1)

    @pl.when(k == 0)
    def _():
        acc_ref[...] = jnp.zeros_like(acc_ref)

    # acc += A_blk (TM,TK) @ [h0 | E_agg]_blk (TK, hidden+edge_dim), f32 accumulate
    acc_ref[...] += jnp.dot(adj_ref[...], hek_ref[...],
                            preferred_element_type=jnp.float32)

    @pl.when(k == pl.num_programs(1) - 1)
    def _():
        he = he_ref[...]                                    # (TM, hidden+edge_dim) bf16
        # fused self + edge term:  [h0 | E_agg] @ [Ws1 ; We1]
        se = jnp.dot(he, wse_ref[...], preferred_element_type=jnp.float32)
        # neighbor term: (A @ [h0 | E_agg]) @ [Wn1 ; 0]  (zero rows kill the E columns,
        # and the extra MXU lanes were free anyway since hidden+edge_dim < 128)
        nbr = jnp.dot(acc_ref[...].astype(jnp.bfloat16), wnp_ref[...],
                      preferred_element_type=jnp.float32)

        bgb = bgb_ref[...]                                  # (3, hidden): b, gamma, beta
        out = se + nbr + bgb[0:1, :]
        mu = jnp.mean(out, axis=-1, keepdims=True)
        var = jnp.mean(jnp.square(out - mu), axis=-1, keepdims=True)
        out = (out - mu) * jax.lax.rsqrt(var + 1e-5) * bgb[1:2, :] + bgb[2:3, :]
        h1 = jnp.maximum(out, 0.0)

        # MLP head: hidden -> hidden (ReLU) -> 1
        hv = hv_ref[...]                                    # (3, hidden): bh1, wh2^T, bh2
        hh = jnp.maximum(
            jnp.dot(h1.astype(jnp.bfloat16), wh1_ref[...],
                    preferred_element_type=jnp.float32) + hv[0:1, :],
            0.0,
        )
        # lane-dense (1, TM) logit row: tiny transposed matmul (q @ k^T pattern) so the
        # output store is an unmasked full-lane vst instead of a 1-wide masked store.
        logits = jnp.dot(hv[1:2, :], hh.T,
                         preferred_element_type=jnp.float32) + hv[2:3, 0:1]
        # sigmoid: exp + approximate reciprocal both on the EUP; clamp the >1 side.
        probs = pl.reciprocal(1.0 + jnp.exp(-logits), approx=True)
        o_ref[...] = jnp.minimum(probs, 1.0)


# -----------------------------------------------------------------------------------
# Wrapper: dense adjacency / edge aggregation (plain-JAX glue) + two pallas_calls
# -----------------------------------------------------------------------------------
def explainer_forward(x, edge_index, edge_attr, params, *, tm=None, tk=2048):
    """Explainer.forward: 2 GNBlocks + MLP head + sigmoid -> (num_nodes, 1) probs."""
    n, in_ch = x.shape
    edge_dim = edge_attr.shape[1]
    hidden = params["ws1"].shape[0]

    # ---- per-generation defaults ----------------------------------------------------
    try:
        vmem_cap = pltpu.get_tpu_info().vmem_capacity_bytes
    except Exception:                                   # query unavailable -> v7x-safe
        vmem_cap = 64 * 1024 * 1024
    vmem_limit = max(32 * 1024 * 1024,
                     min(int(vmem_cap) * 3 // 4, 112 * 1024 * 1024))
    if tm is None:
        tm = 512 if vmem_cap >= 100 * 1024 * 1024 else 256    # v5e/v6e vs v7x

    # ---- tiling: row tiles (tm) x contraction blocks (tk), everything 128-aligned ---
    n128 = _round_up(n, 128)
    tm = max(128, (min(tm, n128) // 128) * 128)
    tk = max(tm, (min(tk, _round_up(n128, tm)) // tm) * tm)
    n_pad = _round_up(n128, tk)
    grid = (n_pad // tm, n_pad // tk)

    src, dst = edge_index[0], edge_index[1]

    # dense adjacency built directly in bf16 (no f32 N^2 intermediate); duplicate edges
    # accumulate, and bf16 counts stay exact up to 256 duplicates per (dst, src) pair.
    # TODO(synk): for very large sparse graphs switch to a CSR / scalar-prefetch gather
    # formulation; the dense O(N^2) adjacency stream is the asymptotic bottleneck.
    adj = (jnp.zeros((n_pad, n_pad), jnp.bfloat16)
           .at[dst, src].add(jnp.ones_like(dst, dtype=jnp.bfloat16)))

    # per-destination edge-attribute aggregation (f32 scatter, bf16 as matmul operand)
    eagg = jnp.zeros((n_pad, edge_dim), jnp.float32).at[dst].add(edge_attr)
    x_pad = jnp.zeros((n_pad, in_ch), jnp.float32).at[:n].set(x)
    xe = jnp.concatenate([x_pad, eagg], axis=-1).astype(jnp.bfloat16)
    x_bf = x_pad.astype(jnp.bfloat16)

    # bf16 weights (f32 MXU accumulation); tiny f32 params packed into slabs
    bf = lambda a: a.astype(jnp.bfloat16)
    wse0 = bf(jnp.concatenate([params["ws0"], params["we0"]], axis=0))
    wn0 = bf(params["wn0"])
    wse1 = bf(jnp.concatenate([params["ws1"], params["we1"]], axis=0))
    wn1p = bf(jnp.concatenate([params["wn1"],
                               jnp.zeros((edge_dim, hidden), jnp.float32)], axis=0))
    wh1 = bf(params["wh1"])
    bgb0 = jnp.concatenate([params["b0"], params["g0"], params["be0"]], axis=0)
    bgb1 = jnp.concatenate([params["b1"], params["g1"], params["be1"]], axis=0)
    hv = jnp.concatenate([params["bh1"], params["wh2"].T,
                          jnp.broadcast_to(params["bh2"], (1, hidden))], axis=0)

    row_i = lambda i, k: (i, 0)        # node-row tile, constant across the k sweep
    col_k = lambda i, k: (k, 0)        # contraction block of the full activations
    blk_ik = lambda i, k: (i, k)       # adjacency tile
    whole = lambda i, k: (0, 0)        # VMEM-resident weights / small slabs

    def adj_spec():
        # triple-buffer the (only) large streamed operand when it is worth the VMEM
        if grid[0] * grid[1] >= 3 and 3 * tm * tk * 2 <= vmem_limit // 4:
            try:
                return pl.BlockSpec((tm, tk), blk_ik, pipeline_mode=pl.Buffered(3))
            except Exception:
                pass
        return pl.BlockSpec((tm, tk), blk_ik)

    cparams = pltpu.CompilerParams(
        dimension_semantics=("parallel", "arbitrary"),
        vmem_limit_bytes=vmem_limit,
    )

    # ---- GN layer 0 (in_channels -> hidden); emits [h0 | E_agg] in bf16 -------------
    he0 = pl.pallas_call(
        _gn0_kernel,
        grid=grid,
        in_specs=[
            pl.BlockSpec((tm, in_ch + edge_dim), row_i),        # [x | E_agg] row tile
            pl.BlockSpec((tk, in_ch), col_k),                   # x contraction block
            adj_spec(),                                         # adjacency tile (bf16)
            pl.BlockSpec((in_ch + edge_dim, hidden), whole),    # [Ws0 ; We0]
            pl.BlockSpec((in_ch, hidden), whole),               # Wn0
            pl.BlockSpec((3, hidden), whole),                   # b0 / gamma0 / beta0
        ],
        out_specs=pl.BlockSpec((tm, hidden + edge_dim), row_i),
        out_shape=jax.ShapeDtypeStruct((n_pad, hidden + edge_dim), jnp.bfloat16),
        scratch_shapes=[pltpu.VMEM((tm, in_ch), jnp.float32)],
        compiler_params=cparams,
    )(xe, x_bf, adj, wse0, wn0, bgb0)

    # ---- GN layer 1 (hidden -> hidden) + MLP head + sigmoid --------------------------
    # TODO(synk): num_layers is fixed at 2 (in->hidden kernel + hidden->hidden+head
    # kernel); deeper baselines would repeat a hidden->hidden kernel, and graphs that
    # fit one row tile could fuse both layers into a single pallas_call.
    probs = pl.pallas_call(
        _gn1_head_kernel,
        grid=grid,
        in_specs=[
            pl.BlockSpec((tm, hidden + edge_dim), row_i),       # [h0 | E_agg] row tile
            pl.BlockSpec((tk, hidden + edge_dim), col_k),       # [h0 | E_agg] k block
            adj_spec(),                                         # adjacency tile (bf16)
            pl.BlockSpec((hidden + edge_dim, hidden), whole),   # [Ws1 ; We1]
            pl.BlockSpec((hidden + edge_dim, hidden), whole),   # [Wn1 ; 0]
            pl.BlockSpec((3, hidden), whole),                   # b1 / gamma1 / beta1
            pl.BlockSpec((hidden, hidden), whole),              # Wh1
            pl.BlockSpec((3, hidden), whole),                   # bh1 / wh2^T / bh2
        ],
        out_specs=pl.BlockSpec((1, tm), lambda i, k: (0, i)),   # lane-dense prob row
        out_shape=jax.ShapeDtypeStruct((1, n_pad), jnp.float32),
        scratch_shapes=[pltpu.VMEM((tm, hidden + edge_dim), jnp.float32)],
        compiler_params=cparams,
    )(he0, he0, adj, wse1, wn1p, bgb1, wh1, hv)

    return probs.reshape(n_pad, 1)[:n]


# -----------------------------------------------------------------------------------
# Pure-JAX references. mirror_kernel_dtypes=True reproduces the kernel's bf16 matmul
# operand policy; False is the faithful f32 (PyTorch-like) baseline.
# -----------------------------------------------------------------------------------
def explainer_reference(x, edge_index, edge_attr, params, *, mirror_kernel_dtypes=True):
    src, dst = edge_index[0], edge_index[1]
    n = x.shape[0]
    cdt = jnp.bfloat16 if mirror_kernel_dtypes else jnp.float32
    c = lambda a: a.astype(cdt)

    adj = jnp.zeros((n, n), jnp.float32).at[dst, src].add(1.0).astype(cdt)
    eagg = jnp.zeros((n, edge_attr.shape[1]), jnp.float32).at[dst].add(edge_attr)

    def ln(v, g, be):
        mu = jnp.mean(v, axis=-1, keepdims=True)
        var = jnp.mean(jnp.square(v - mu), axis=-1, keepdims=True)
        return (v - mu) * jax.lax.rsqrt(var + 1e-5) * g + be

    mdot = lambda a, b: jnp.dot(c(a), c(b), preferred_element_type=jnp.float32)

    agg0 = mdot(adj, x)
    pre0 = (mdot(x, params["ws0"]) + mdot(agg0, params["wn0"])
            + mdot(eagg, params["we0"]) + params["b0"])
    h0 = jnp.maximum(ln(pre0, params["g0"], params["be0"]), 0.0)
    if mirror_kernel_dtypes:
        h0 = c(h0).astype(jnp.float32)      # h0 is carried between the kernels in bf16

    agg1 = mdot(adj, h0)
    pre1 = (mdot(h0, params["ws1"]) + mdot(agg1, params["wn1"])
            + mdot(eagg, params["we1"]) + params["b1"])
    h1 = jnp.maximum(ln(pre1, params["g1"], params["be1"]), 0.0)

    hh = jnp.maximum(mdot(h1, params["wh1"]) + params["bh1"], 0.0)
    logits = jnp.dot(hh, params["wh2"], preferred_element_type=jnp.float32) + params["bh2"]
    return jax.nn.sigmoid(logits)


# -----------------------------------------------------------------------------------
# Deterministic synthetic parameters + example inputs
# -----------------------------------------------------------------------------------
def make_params(key, in_channels, hidden, edge_dim):
    keys = jax.random.split(key, 8)

    def lin(k, fan_in, fan_out):
        scale = 1.0 / jnp.sqrt(jnp.float32(fan_in))
        return jax.random.uniform(k, (fan_in, fan_out), jnp.float32, -scale, scale)

    return {
        # GN layer 0 (in_channels -> hidden)
        "ws0": lin(keys[0], in_channels, hidden),
        "wn0": lin(keys[1], in_channels, hidden),
        "we0": lin(keys[2], edge_dim, hidden),
        "b0": jnp.zeros((1, hidden), jnp.float32),
        "g0": jnp.ones((1, hidden), jnp.float32),
        "be0": jnp.zeros((1, hidden), jnp.float32),
        # GN layer 1 (hidden -> hidden)
        "ws1": lin(keys[3], hidden, hidden),
        "wn1": lin(keys[4], hidden, hidden),
        "we1": lin(keys[5], edge_dim, hidden),
        "b1": jnp.zeros((1, hidden), jnp.float32),
        "g1": jnp.ones((1, hidden), jnp.float32),
        "be1": jnp.zeros((1, hidden), jnp.float32),
        # MLP head (hidden -> hidden -> 1)
        "wh1": lin(keys[6], hidden, hidden),
        "bh1": jnp.zeros((1, hidden), jnp.float32),
        "wh2": lin(keys[7], hidden, 1),
        "bh2": jnp.zeros((1, 1), jnp.float32),
    }


if __name__ == "__main__":
    NUM_NODES = 48
    NUM_EDGES = 96
    IN_CHANNELS = 8       # baseline.in_channels
    HIDDEN_CHANNELS = 32  # baseline.hidden_channels
    EDGE_DIM = 4          # baseline.edge_dim
    # baseline.num_layers = 2 (two GNBlocks), use_norm = True

    key = jax.random.PRNGKey(0)
    k_x, k_src, k_dst, k_ea, k_p = jax.random.split(key, 5)

    x = jax.random.normal(k_x, (NUM_NODES, IN_CHANNELS), jnp.float32)
    edge_index = jnp.stack(
        [
            jax.random.randint(k_src, (NUM_EDGES,), 0, NUM_NODES),
            jax.random.randint(k_dst, (NUM_EDGES,), 0, NUM_NODES),
        ],
        axis=0,
    ).astype(jnp.int32)
    edge_attr = jax.random.normal(k_ea, (NUM_EDGES, EDGE_DIM), jnp.float32)

    params = make_params(k_p, IN_CHANNELS, HIDDEN_CHANNELS, EDGE_DIM)

    fwd = jax.jit(functools.partial(explainer_forward))
    probs = fwd(x, edge_index, edge_attr, params)
    jax.block_until_ready(probs)

    assert probs.shape == (NUM_NODES, 1)
    assert bool(jnp.all(jnp.isfinite(probs)))
    assert bool(jnp.all((probs >= 0.0) & (probs <= 1.0)))

    ref_mirror = explainer_reference(x, edge_index, edge_attr, params,
                                     mirror_kernel_dtypes=True)
    ref_f32 = explainer_reference(x, edge_index, edge_attr, params,
                                  mirror_kernel_dtypes=False)
    err_mirror = float(jnp.max(jnp.abs(probs - ref_mirror)))
    err_f32 = float(jnp.max(jnp.abs(probs - ref_f32)))
    # mirrored policy: only approx-reciprocal / summation-order differences remain
    assert err_mirror < 2e-2, err_mirror
    # true f32 baseline: bf16-operand matmuls + approx sigmoid stay well inside 5e-2
    assert err_f32 < 5e-2, err_f32

    print("KERNEL_OK")
</pallas_src>

<mosaic_0001>
module attributes {stable_mosaic.version = 11 : i64} {
  func.func @_gn0_kernel(%arg0: i32, %arg1: i32, %arg2: memref<128x12xbf16, #tpu.memory_space<vmem>>, %arg3: memref<128x8xbf16, #tpu.memory_space<vmem>>, %arg4: memref<128x128xbf16, #tpu.memory_space<vmem>>, %arg5: memref<12x32xbf16, #tpu.memory_space<vmem>>, %arg6: memref<8x32xbf16, #tpu.memory_space<vmem>>, %arg7: memref<3x32xf32, #tpu.memory_space<vmem>>, %arg8: memref<128x36xbf16, #tpu.memory_space<vmem>>, %arg9: memref<128x8xf32, #tpu.memory_space<vmem>>) attributes {dimension_semantics = [#tpu.dimension_semantics<parallel>, #tpu.dimension_semantics<arbitrary>], iteration_bounds = array<i64: 1, 1>, scalar_prefetch = 0 : i64, scratch_operands = 1 : i64, tpu.core_type = #tpu.core_type<tc>, window_params = [{transform_indices = @transform_0, window_bounds = array<i64: 128, 12>}, {transform_indices = @transform_1, window_bounds = array<i64: 128, 8>}, {transform_indices = @transform_2, window_bounds = array<i64: 128, 128>}, {pipeline_mode = #tpu.pipeline_mode<synchronous>, transform_indices = @transform_3, window_bounds = array<i64: 12, 32>}, {pipeline_mode = #tpu.pipeline_mode<synchronous>, transform_indices = @transform_4, window_bounds = array<i64: 8, 32>}, {pipeline_mode = #tpu.pipeline_mode<synchronous>, transform_indices = @transform_5, window_bounds = array<i64: 3, 32>}, {transform_indices = @transform_6, window_bounds = array<i64: 128, 36>}]} {
    %c0_i32 = arith.constant 0 : i32
    %0 = arith.cmpi eq, %arg1, %c0_i32 : i32
    %1 = arith.extui %0 : i1 to i32
    %c0_i32_0 = arith.constant 0 : i32
    %2 = arith.cmpi ne, %1, %c0_i32_0 : i32
    scf.if %2 {
      %cst_10 = arith.constant 0.000000e+00 : f32
      %12 = vector.broadcast %cst_10 : f32 to vector<128x8xf32>
      %c0_11 = arith.constant 0 : index
      %c0_12 = arith.constant 0 : index
      %13 = vector.load %arg9[%c0_11, %c0_12] : memref<128x8xf32, #tpu.memory_space<vmem>>, vector<128x8xf32>
      tpu.vector_store %arg9[%c0_11, %c0_12], %12 {strides = array<i32>} : memref<128x8xf32, #tpu.memory_space<vmem>>, vector<128x8xf32>,
    } else {
    }
    %c0 = arith.constant 0 : index
    %c0_1 = arith.constant 0 : index
    %3 = vector.load %arg9[%c0, %c0_1] : memref<128x8xf32, #tpu.memory_space<vmem>>, vector<128x8xf32>
    %c0_2 = arith.constant 0 : index
    %c0_3 = arith.constant 0 : index
    %4 = vector.load %arg4[%c0_2, %c0_3] : memref<128x128xbf16, #tpu.memory_space<vmem>>, vector<128x128xbf16>
    %c0_4 = arith.constant 0 : index
    %c0_5 = arith.constant 0 : index
    %5 = vector.load %arg3[%c0_4, %c0_5] : memref<128x8xbf16, #tpu.memory_space<vmem>>, vector<128x8xbf16>
    %cst = arith.constant dense<0.000000e+00> : vector<128x8xf32>
    %6 = tpu.matmul %4, %5, %cst {dimension_numbers = #tpu.dot_dimension_numbers<[1], [0], [0], [1], [0, 0, 1, 1], [], []>} : vector<128x128xbf16>, vector<128x8xbf16>, vector<128x8xf32> -> vector<128x8xf32>
    %7 = arith.addf %3, %6 : vector<128x8xf32>
    %c0_6 = arith.constant 0 : index
    %c0_7 = arith.constant 0 : index
    %8 = vector.load %arg9[%c0_6, %c0_7] : memref<128x8xf32, #tpu.memory_space<vmem>>, vector<128x8xf32>
    tpu.vector_store %arg9[%c0_6, %c0_7], %7 {strides = array<i32>} : memref<128x8xf32, #tpu.memory_space<vmem>>, vector<128x8xf32>,
    %c0_i32_8 = arith.constant 0 : i32
    %9 = arith.cmpi eq, %arg1, %c0_i32_8 : i32
    %10 = arith.extui %9 : i1 to i32
    %c0_i32_9 = arith.constant 0 : i32
    %11 = arith.cmpi ne, %10, %c0_i32_9 : i32
    scf.if %11 {
      %c0_10 = arith.constant 0 : index
      %c0_11 = arith.constant 0 : index
      %12 = vector.load %arg2[%c0_10, %c0_11] : memref<128x12xbf16, #tpu.memory_space<vmem>>, vector<128x12xbf16>
      %c0_12 = arith.constant 0 : index
      %c0_13 = arith.constant 0 : index
      %13 = vector.load %arg5[%c0_12, %c0_13] : memref<12x32xbf16, #tpu.memory_space<vmem>>, vector<12x32xbf16>
      %cst_14 = arith.constant dense<0.000000e+00> : vector<128x32xf32>
      %14 = tpu.matmul %12, %13, %cst_14 {dimension_numbers = #tpu.dot_dimension_numbers<[1], [0], [0], [1], [0, 0, 1, 1], [], []>} : vector<128x12xbf16>, vector<12x32xbf16>, vector<128x32xf32> -> vector<128x32xf32>
      %c0_15 = arith.constant 0 : index
      %c0_16 = arith.constant 0 : index
      %15 = vector.load %arg9[%c0_15, %c0_16] : memref<128x8xf32, #tpu.memory_space<vmem>>, vector<128x8xf32>
      %16 = arith.truncf %15 : vector<128x8xf32> to vector<128x8xbf16>
      %c0_17 = arith.constant 0 : index
      %c0_18 = arith.constant 0 : index
      %17 = vector.load %arg6[%c0_17, %c0_18] : memref<8x32xbf16, #tpu.memory_space<vmem>>, vector<8x32xbf16>
      %cst_19 = arith.constant dense<0.000000e+00> : vector<128x32xf32>
      %18 = tpu.matmul %16, %17, %cst_19 {dimension_numbers = #tpu.dot_dimension_numbers<[1], [0], [0], [1], [0, 0, 1, 1], [], []>} : vector<128x8xbf16>, vector<8x32xbf16>, vector<128x32xf32> -> vector<128x32xf32>
      %c0_20 = arith.constant 0 : index
      %c0_21 = arith.constant 0 : index
      %19 = vector.load %arg7[%c0_20, %c0_21] : memref<3x32xf32, #tpu.memory_space<vmem>>, vector<3x32xf32>
      %20 = arith.addf %14, %18 : vector<128x32xf32>
      %21 = vector.extract_strided_slice %19 {offsets = [0, 0], sizes = [1, 32], strides = [1, 1]} : vector<3x32xf32> to vector<1x32xf32>
      %22 = vector.broadcast %21 : vector<1x32xf32> to vector<128x32xf32>
      %23 = arith.addf %20, %22 : vector<128x32xf32>
      %cst_22 = arith.constant dense<0.000000e+00> : vector<128xf32>
      %24 = vector.multi_reduction <add>, %23, %cst_22 [1] : vector<128x32xf32> to vector<128xf32>
      %25 = vector.shape_cast %24 : vector<128xf32> to vector<128x1xf32>
      %cst_23 = arith.constant 3.200000e+01 : f32
      %26 = vector.broadcast %cst_23 : f32 to vector<128x1xf32>
      %27 = arith.divf %25, %26 : vector<128x1xf32>
      %28 = vector.broadcast %27 : vector<128x1xf32> to vector<128x32xf32>
      %29 = arith.subf %23, %28 : vector<128x32xf32>
      %30 = arith.mulf %29, %29 : vector<128x32xf32>
      %cst_24 = arith.constant dense<0.000000e+00> : vector<128xf32>
      %31 = vector.multi_reduction <add>, %30, %cst_24 [1] : vector<128x32xf32> to vector<128xf32>
      %32 = vector.shape_cast %31 : vector<128xf32> to vector<128x1xf32>
      %cst_25 = arith.constant 3.200000e+01 : f32
      %33 = vector.broadcast %cst_25 : f32 to vector<128x1xf32>
      %34 = arith.divf %32, %33 : vector<128x1xf32>
      %35 = vector.broadcast %27 : vector<128x1xf32> to vector<128x32xf32>
      %36 = arith.subf %23, %35 : vector<128x32xf32>
      %cst_26 = arith.constant 9.99999974E-6 : f32
      %37 = vector.broadcast %cst_26 : f32 to vector<128x1xf32>
      %38 = arith.addf %34, %37 : vector<128x1xf32>
      %39 = math.rsqrt %38 : vector<128x1xf32>
      %40 = vector.broadcast %39 : vector<128x1xf32> to vector<128x32xf32>
      %41 = arith.mulf %36, %40 : vector<128x32xf32>
      %42 = vector.extract_strided_slice %19 {offsets = [1, 0], sizes = [1, 32], strides = [1, 1]} : vector<3x32xf32> to vector<1x32xf32>
      %43 = vector.broadcast %42 : vector<1x32xf32> to vector<128x32xf32>
      %44 = arith.mulf %41, %43 : vector<128x32xf32>
      %45 = vector.extract_strided_slice %19 {offsets = [2, 0], sizes = [1, 32], strides = [1, 1]} : vector<3x32xf32> to vector<1x32xf32>
      %46 = vector.broadcast %45 : vector<1x32xf32> to vector<128x32xf32>
      %47 = arith.addf %44, %46 : vector<128x32xf32>
      %cst_27 = arith.constant 0.000000e+00 : f32
      %48 = vector.broadcast %cst_27 : f32 to vector<128x32xf32>
      %49 = arith.maximumf %47, %48 : vector<128x32xf32>
      %50 = arith.truncf %49 : vector<128x32xf32> to vector<128x32xbf16>
      %c0_28 = arith.constant 0 : index
      %c0_29 = arith.constant 0 : index
      %51 = vector.load %arg8[%c0_28, %c0_29] : memref<128x36xbf16, #tpu.memory_space<vmem>>, vector<128x32xbf16>
      tpu.vector_store %arg8[%c0_28, %c0_29], %50 {strides = array<i32>} : memref<128x36xbf16, #tpu.memory_space<vmem>>, vector<128x32xbf16>,
      %52 = vector.extract_strided_slice %12 {offsets = [0, 8], sizes = [128, 4], strides = [1, 1]} : vector<128x12xbf16> to vector<128x4xbf16>
      %c0_30 = arith.constant 0 : index
      %c32 = arith.constant 32 : index
      %53 = vector.load %arg8[%c0_30, %c32] : memref<128x36xbf16, #tpu.memory_space<vmem>>, vector<128x4xbf16>
      tpu.vector_store %arg8[%c0_30, %c32], %52 {strides = array<i32>} : memref<128x36xbf16, #tpu.memory_space<vmem>>, vector<128x4xbf16>,
    } else {
    }
    return
  }
  func.func @transform_0(%arg0: i32, %arg1: i32) -> (i32, i32) {
    %c0_i32 = arith.constant 0 : i32
    %c0_i32_0 = arith.constant 0 : i32
    return %arg0, %c0_i32 : i32, i32
  }
  func.func @transform_1(%arg0: i32, %arg1: i32) -> (i32, i32) {
    %c0_i32 = arith.constant 0 : i32
    %c0_i32_0 = arith.constant 0 : i32
    return %arg1, %c0_i32 : i32, i32
  }
  func.func @transform_2(%arg0: i32, %arg1: i32) -> (i32, i32) {
    %c0_i32 = arith.constant 0 : i32
    return %arg0, %arg1 : i32, i32
  }
  func.func @transform_3(%arg0: i32, %arg1: i32) -> (i32, i32) {
    %c0_i32 = arith.constant 0 : i32
    %c0_i32_0 = arith.constant 0 : i32
    %c0_i32_1 = arith.constant 0 : i32
    return %c0_i32, %c0_i32_0 : i32, i32
  }
  func.func @transform_4(%arg0: i32, %arg1: i32) -> (i32, i32) {
    %c0_i32 = arith.constant 0 : i32
    %c0_i32_0 = arith.constant 0 : i32
    %c0_i32_1 = arith.constant 0 : i32
    return %c0_i32, %c0_i32_0 : i32, i32
  }
  func.func @transform_5(%arg0: i32, %arg1: i32) -> (i32, i32) {
    %c0_i32 = arith.constant 0 : i32
    %c0_i32_0 = arith.constant 0 : i32
    %c0_i32_1 = arith.constant 0 : i32
    return %c0_i32, %c0_i32_0 : i32, i32
  }
  func.func @transform_6(%arg0: i32, %arg1: i32) -> (i32, i32) {
    %c0_i32 = arith.constant 0 : i32
    %c0_i32_0 = arith.constant 0 : i32
    return %arg0, %c0_i32 : i32, i32
  }
}

module attributes {stable_mosaic.version = 11 : i64} {
  func.func @_gn1_head_kernel(%arg0: i32, %arg1: i32, %arg2: memref<128x36xbf16, #tpu.memory_space<vmem>>, %arg3: memref<128x36xbf16, #tpu.memory_space<vmem>>, %arg4: memref<128x128xbf16, #tpu.memory_space<vmem>>, %arg5: memref<36x32xbf16, #tpu.memory_space<vmem>>, %arg6: memref<36x32xbf16, #tpu.memory_space<vmem>>, %arg7: memref<3x32xf32, #tpu.memory_space<vmem>>, %arg8: memref<32x32xbf16, #tpu.memory_space<vmem>>, %arg9: memref<3x32xf32, #tpu.memory_space<vmem>>, %arg10: memref<1x128xf32, #tpu.memory_space<vmem>>, %arg11: memref<128x36xf32, #tpu.memory_space<vmem>>) attributes {dimension_semantics = [#tpu.dimension_semantics<parallel>, #tpu.dimension_semantics<arbitrary>], iteration_bounds = array<i64: 1, 1>, scalar_prefetch = 0 : i64, scratch_operands = 1 : i64, tpu.core_type = #tpu.core_type<tc>, window_params = [{transform_indices = @transform_0, window_bounds = array<i64: 128, 36>}, {transform_indices = @transform_1, window_bounds = array<i64: 128, 36>}, {transform_indices = @transform_2, window_bounds = array<i64: 128, 128>}, {pipeline_mode = #tpu.pipeline_mode<synchronous>, transform_indices = @transform_3, window_bounds = array<i64: 36, 32>}, {pipeline_mode = #tpu.pipeline_mode<synchronous>, transform_indices = @transform_4, window_bounds = array<i64: 36, 32>}, {pipeline_mode = #tpu.pipeline_mode<synchronous>, transform_indices = @transform_5, window_bounds = array<i64: 3, 32>}, {pipeline_mode = #tpu.pipeline_mode<synchronous>, transform_indices = @transform_6, window_bounds = array<i64: 32, 32>}, {pipeline_mode = #tpu.pipeline_mode<synchronous>, transform_indices = @transform_7, window_bounds = array<i64: 3, 32>}, {transform_indices = @transform_8, window_bounds = array<i64: 1, 128>}]} {
    %c0_i32 = arith.constant 0 : i32
    %0 = arith.cmpi eq, %arg1, %c0_i32 : i32
    %1 = arith.extui %0 : i1 to i32
    %c0_i32_0 = arith.constant 0 : i32
    %2 = arith.cmpi ne, %1, %c0_i32_0 : i32
    scf.if %2 {
      %cst_10 = arith.constant 0.000000e+00 : f32
      %12 = vector.broadcast %cst_10 : f32 to vector<128x36xf32>
      %c0_11 = arith.constant 0 : index
      %c0_12 = arith.constant 0 : index
      %13 = vector.load %arg11[%c0_11, %c0_12] : memref<128x36xf32, #tpu.memory_space<vmem>>, vector<128x36xf32>
      tpu.vector_store %arg11[%c0_11, %c0_12], %12 {strides = array<i32>} : memref<128x36xf32, #tpu.memory_space<vmem>>, vector<128x36xf32>,
    } else {
    }
    %c0 = arith.constant 0 : index
    %c0_1 = arith.constant 0 : index
    %3 = vector.load %arg11[%c0, %c0_1] : memref<128x36xf32, #tpu.memory_space<vmem>>, vector<128x36xf32>
    %c0_2 = arith.constant 0 : index
    %c0_3 = arith.constant 0 : index
    %4 = vector.load %arg4[%c0_2, %c0_3] : memref<128x128xbf16, #tpu.memory_space<vmem>>, vector<128x128xbf16>
    %c0_4 = arith.constant 0 : index
    %c0_5 = arith.constant 0 : index
    %5 = vector.load %arg3[%c0_4, %c0_5] : memref<128x36xbf16, #tpu.memory_space<vmem>>, vector<128x36xbf16>
    %cst = arith.constant dense<0.000000e+00> : vector<128x36xf32>
    %6 = tpu.matmul %4, %5, %cst {dimension_numbers = #tpu.dot_dimension_numbers<[1], [0], [0], [1], [0, 0, 1, 1], [], []>} : vector<128x128xbf16>, vector<128x36xbf16>, vector<128x36xf32> -> vector<128x36xf32>
    %7 = arith.addf %3, %6 : vector<128x36xf32>
    %c0_6 = arith.constant 0 : index
    %c0_7 = arith.constant 0 : index
    %8 = vector.load %arg11[%c0_6, %c0_7] : memref<128x36xf32, #tpu.memory_space<vmem>>, vector<128x36xf32>
    tpu.vector_store %arg11[%c0_6, %c0_7], %7 {strides = array<i32>} : memref<128x36xf32, #tpu.memory_space<vmem>>, vector<128x36xf32>,
    %c0_i32_8 = arith.constant 0 : i32
    %9 = arith.cmpi eq, %arg1, %c0_i32_8 : i32
    %10 = arith.extui %9 : i1 to i32
    %c0_i32_9 = arith.constant 0 : i32
    %11 = arith.cmpi ne, %10, %c0_i32_9 : i32
    scf.if %11 {
      %c0_10 = arith.constant 0 : index
      %c0_11 = arith.constant 0 : index
      %12 = vector.load %arg2[%c0_10, %c0_11] : memref<128x36xbf16, #tpu.memory_space<vmem>>, vector<128x36xbf16>
      %c0_12 = arith.constant 0 : index
      %c0_13 = arith.constant 0 : index
      %13 = vector.load %arg5[%c0_12, %c0_13] : memref<36x32xbf16, #tpu.memory_space<vmem>>, vector<36x32xbf16>
      %cst_14 = arith.constant dense<0.000000e+00> : vector<128x32xf32>
      %14 = tpu.matmul %12, %13, %cst_14 {dimension_numbers = #tpu.dot_dimension_numbers<[1], [0], [0], [1], [0, 0, 1, 1], [], []>} : vector<128x36xbf16>, vector<36x32xbf16>, vector<128x32xf32> -> vector<128x32xf32>
      %c0_15 = arith.constant 0 : index
      %c0_16 = arith.constant 0 : index
      %15 = vector.load %arg11[%c0_15, %c0_16] : memref<128x36xf32, #tpu.memory_space<vmem>>, vector<128x36xf32>
      %16 = arith.truncf %15 : vector<128x36xf32> to vector<128x36xbf16>
      %c0_17 = arith.constant 0 : index
      %c0_18 = arith.constant 0 : index
      %17 = vector.load %arg6[%c0_17, %c0_18] : memref<36x32xbf16, #tpu.memory_space<vmem>>, vector<36x32xbf16>
      %cst_19 = arith.constant dense<0.000000e+00> : vector<128x32xf32>
      %18 = tpu.matmul %16, %17, %cst_19 {dimension_numbers = #tpu.dot_dimension_numbers<[1], [0], [0], [1], [0, 0, 1, 1], [], []>} : vector<128x36xbf16>, vector<36x32xbf16>, vector<128x32xf32> -> vector<128x32xf32>
      %c0_20 = arith.constant 0 : index
      %c0_21 = arith.constant 0 : index
      %19 = vector.load %arg7[%c0_20, %c0_21] : memref<3x32xf32, #tpu.memory_space<vmem>>, vector<3x32xf32>
      %20 = arith.addf %14, %18 : vector<128x32xf32>
      %21 = vector.extract_strided_slice %19 {offsets = [0, 0], sizes = [1, 32], strides = [1, 1]} : vector<3x32xf32> to vector<1x32xf32>
      %22 = vector.broadcast %21 : vector<1x32xf32> to vector<128x32xf32>
      %23 = arith.addf %20, %22 : vector<128x32xf32>
      %cst_22 = arith.constant dense<0.000000e+00> : vector<128xf32>
      %24 = vector.multi_reduction <add>, %23, %cst_22 [1] : vector<128x32xf32> to vector<128xf32>
      %25 = vector.shape_cast %24 : vector<128xf32> to vector<128x1xf32>
      %cst_23 = arith.constant 3.200000e+01 : f32
      %26 = vector.broadcast %cst_23 : f32 to vector<128x1xf32>
      %27 = arith.divf %25, %26 : vector<128x1xf32>
      %28 = vector.broadcast %27 : vector<128x1xf32> to vector<128x32xf32>
      %29 = arith.subf %23, %28 : vector<128x32xf32>
      %30 = arith.mulf %29, %29 : vector<128x32xf32>
      %cst_24 = arith.constant dense<0.000000e+00> : vector<128xf32>
      %31 = vector.multi_reduction <add>, %30, %cst_24 [1] : vector<128x32xf32> to vector<128xf32>
      %32 = vector.shape_cast %31 : vector<128xf32> to vector<128x1xf32>
      %cst_25 = arith.constant 3.200000e+01 : f32
      %33 = vector.broadcast %cst_25 : f32 to vector<128x1xf32>
      %34 = arith.divf %32, %33 : vector<128x1xf32>
      %35 = vector.broadcast %27 : vector<128x1xf32> to vector<128x32xf32>
      %36 = arith.subf %23, %35 : vector<128x32xf32>
      %cst_26 = arith.constant 9.99999974E-6 : f32
      %37 = vector.broadcast %cst_26 : f32 to vector<128x1xf32>
      %38 = arith.addf %34, %37 : vector<128x1xf32>
      %39 = math.rsqrt %38 : vector<128x1xf32>
      %40 = vector.broadcast %39 : vector<128x1xf32> to vector<128x32xf32>
      %41 = arith.mulf %36, %40 : vector<128x32xf32>
      %42 = vector.extract_strided_slice %19 {offsets = [1, 0], sizes = [1, 32], strides = [1, 1]} : vector<3x32xf32> to vector<1x32xf32>
      %43 = vector.broadcast %42 : vector<1x32xf32> to vector<128x32xf32>
      %44 = arith.mulf %41, %43 : vector<128x32xf32>
      %45 = vector.extract_strided_slice %19 {offsets = [2, 0], sizes = [1, 32], strides = [1, 1]} : vector<3x32xf32> to vector<1x32xf32>
      %46 = vector.broadcast %45 : vector<1x32xf32> to vector<128x32xf32>
      %47 = arith.addf %44, %46 : vector<128x32xf32>
      %cst_27 = arith.constant 0.000000e+00 : f32
      %48 = vector.broadcast %cst_27 : f32 to vector<128x32xf32>
      %49 = arith.maximumf %47, %48 : vector<128x32xf32>
      %c0_28 = arith.constant 0 : index
      %c0_29 = arith.constant 0 : index
      %50 = vector.load %arg9[%c0_28, %c0_29] : memref<3x32xf32, #tpu.memory_space<vmem>>, vector<3x32xf32>
      %51 = arith.truncf %49 : vector<128x32xf32> to vector<128x32xbf16>
      %c0_30 = arith.constant 0 : index
      %c0_31 = arith.constant 0 : index
      %52 = vector.load %arg8[%c0_30, %c0_31] : memref<32x32xbf16, #tpu.memory_space<vmem>>, vector<32x32xbf16>
      %cst_32 = arith.constant dense<0.000000e+00> : vector<128x32xf32>
      %53 = tpu.matmul %51, %52, %cst_32 {dimension_numbers = #tpu.dot_dimension_numbers<[1], [0], [0], [1], [0, 0, 1, 1], [], []>} : vector<128x32xbf16>, vector<32x32xbf16>, vector<128x32xf32> -> vector<128x32xf32>
      %54 = vector.extract_strided_slice %50 {offsets = [0, 0], sizes = [1, 32], strides = [1, 1]} : vector<3x32xf32> to vector<1x32xf32>
      %55 = vector.broadcast %54 : vector<1x32xf32> to vector<128x32xf32>
      %56 = arith.addf %53, %55 : vector<128x32xf32>
      %cst_33 = arith.constant 0.000000e+00 : f32
      %57 = vector.broadcast %cst_33 : f32 to vector<128x32xf32>
      %58 = arith.maximumf %56, %57 : vector<128x32xf32>
      %59 = vector.extract_strided_slice %50 {offsets = [1, 0], sizes = [1, 32], strides = [1, 1]} : vector<3x32xf32> to vector<1x32xf32>
      %60 = tpu.transpose %58, [1, 0] : vector<128x32xf32> -> vector<32x128xf32>
      %cst_34 = arith.constant dense<0.000000e+00> : vector<1x128xf32>
      %61 = tpu.matmul %59, %60, %cst_34 {dimension_numbers = #tpu.dot_dimension_numbers<[1], [0], [0], [1], [0, 0, 1, 1], [], []>} : vector<1x32xf32>, vector<32x128xf32>, vector<1x128xf32> -> vector<1x128xf32>
      %62 = vector.extract_strided_slice %50 {offsets = [2, 0], sizes = [1, 1], strides = [1, 1]} : vector<3x32xf32> to vector<1x1xf32>
      %63 = vector.broadcast %62 : vector<1x1xf32> to vector<1x128xf32>
      %64 = arith.addf %61, %63 : vector<1x128xf32>
      %cst_35 = arith.constant 0.000000e+00 : f32
      %65 = vector.broadcast %cst_35 : f32 to vector<1x128xf32>
      %66 = arith.subf %65, %64 : vector<1x128xf32>
      %67 = math.exp %66 : vector<1x128xf32>
      %cst_36 = arith.constant 1.000000e+00 : f32
      %68 = vector.broadcast %cst_36 : f32 to vector<1x128xf32>
      %69 = arith.addf %68, %67 : vector<1x128xf32>
      %70 = tpu.reciprocal %69 {approx = true} : vector<1x128xf32> -> vector<1x128xf32>
      %cst_37 = arith.constant 1.000000e+00 : f32
      %71 = vector.broadcast %cst_37 : f32 to vector<1x128xf32>
      %72 = arith.minimumf %70, %71 : vector<1x128xf32>
      %c0_38 = arith.constant 0 : index
      %c0_39 = arith.constant 0 : index
      %73 = vector.load %arg10[%c0_38, %c0_39] : memref<1x128xf32, #tpu.memory_space<vmem>>, vector<1x128xf32>
      tpu.vector_store %arg10[%c0_38, %c0_39], %72 {strides = array<i32>} : memref<1x128xf32, #tpu.memory_space<vmem>>, vector<1x128xf32>,
    } else {
    }
    return
  }
  func.func @transform_0(%arg0: i32, %arg1: i32) -> (i32, i32) {
    %c0_i32 = arith.constant 0 : i32
    %c0_i32_0 = arith.constant 0 : i32
    return %arg0, %c0_i32 : i32, i32
  }
  func.func @transform_1(%arg0: i32, %arg1: i32) -> (i32, i32) {
    %c0_i32 = arith.constant 0 : i32
    %c0_i32_0 = arith.constant 0 : i32
    return %arg1, %c0_i32 : i32, i32
  }
  func.func @transform_2(%arg0: i32, %arg1: i32) -> (i32, i32) {
    %c0_i32 = arith.constant 0 : i32
    return %arg0, %arg1 : i32, i32
  }
  func.func @transform_3(%arg0: i32, %arg1: i32) -> (i32, i32) {
    %c0_i32 = arith.constant 0 : i32
    %c0_i32_0 = arith.constant 0 : i32
    %c0_i32_1 = arith.constant 0 : i32
    return %c0_i32, %c0_i32_0 : i32, i32
  }
  func.func @transform_4(%arg0: i32, %arg1: i32) -> (i32, i32) {
    %c0_i32 = arith.constant 0 : i32
    %c0_i32_0 = arith.constant 0 : i32
    %c0_i32_1 = arith.constant 0 : i32
    return %c0_i32, %c0_i32_0 : i32, i32
  }
  func.func @transform_5(%arg0: i32, %arg1: i32) -> (i32, i32) {
    %c0_i32 = arith.constant 0 : i32
    %c0_i32_0 = arith.constant 0 : i32
    %c0_i32_1 = arith.constant 0 : i32
    return %c0_i32, %c0_i32_0 : i32, i32
  }
  func.func @transform_6(%arg0: i32, %arg1: i32) -> (i32, i32) {
    %c0_i32 = arith.constant 0 : i32
    %c0_i32_0 = arith.constant 0 : i32
    %c0_i32_1 = arith.constant 0 : i32
    return %c0_i32, %c0_i32_0 : i32, i32
  }
  func.func @transform_7(%arg0: i32, %arg1: i32) -> (i32, i32) {
    %c0_i32 = arith.constant 0 : i32
    %c0_i32_0 = arith.constant 0 : i32
    %c0_i32_1 = arith.constant 0 : i32
    return %c0_i32, %c0_i32_0 : i32, i32
  }
  func.func @transform_8(%arg0: i32, %arg1: i32) -> (i32, i32) {
    %c0_i32 = arith.constant 0 : i32
    %c0_i32_0 = arith.constant 0 : i32
    return %c0_i32, %arg0 : i32, i32
  }
}

</mosaic_0001>

<bundles_post_ra>
// kernel: explainer_forward.2
= control target key start
LH: loop header
LB: loop body
LE: loop exit
PB: predicated region body
PF: predicated region fallthrough
CT: control target
= control target key end

     0   :  { %vm28_vm0 = vcmask 64512   ;;  %v1350_v1 = vmov 0.0   ;;  %vm389_vm1 = vcmask 1043456   ;;  %vm561_vm2 = vcmask 1045504   ;;  %s1351_s17 = smov 24   ;;  %s1996_s1 = inlined_call_operand.vmem [shape: bf16[128,8], index: 1, kind: input, shape index: {}]   ;;  %s1997_s2 = inlined_call_operand.vmem [shape: bf16[128,128], index: 2, kind: input, shape index: {}]   ;;  %s1998_s4 = inlined_call_operand.vmem [shape: bf16[8,32], index: 4, kind: input, shape index: {}]   ;;  %s1999_s3 = inlined_call_operand.vmem [shape: bf16[12,32], index: 3, kind: input, shape index: {}]   ;;  %s2000_s0 = inlined_call_operand.vmem [shape: bf16[128,12], index: 0, kind: input, shape index: {}]   ;;  %s2001_s5 = inlined_call_operand.vmem [shape: f32[3,32], index: 5, kind: input, shape index: {}]   ;;  %s2002_s6 = inlined_call_operand.vmem [shape: bf16[128,36], index: 6, kind: output, shape index: {}]  }
   0x1   :  { %v1293_v0 = vld [vmem:[%s1996_s1] sm:$0xff]   ;;  %31 = vst.msk [vmem:[#allocation2 + $0x10] sm:$0xff] %vm28_vm0, %v1350_v1  ;;  %29 = vst.msk [vmem:[#allocation2] sm:$0xff] %vm28_vm0, %v1350_v1  ;;  %v1294_v2 = vld [vmem:[%s1996_s1 + $0x8] sm:$0xff]   ;;  %vm536_vm3 = vcmask 97280   ;;  %vm682_vm4 = vcmask 261120  }
   0x2   :  { %30 = vst.msk [vmem:[#allocation2 + $0x8] sm:$0xff] %vm28_vm0, %v1350_v1  ;;  %32 = vst.msk [vmem:[#allocation2 + $0x18] sm:$0xff] %vm28_vm0, %v1350_v1  ;;  %1205 = vmatprep.subr.bf16.mxu0 %v1293_v0  ;;  %v1295_v3 = vld [vmem:[%s1996_s1 + $0x10] sm:$0xff]   ;;  %v1296_v4 = vld [vmem:[%s1996_s1 + $0x18] sm:$0xff]   ;;  %vm1012_vm5 = vcmask 257024   ;;  %vm1077_vm6 = vcmask 290048  }
   0x3   :  { %33 = vst.msk [vmem:[#allocation2 + $0x20] sm:$0xff] %vm28_vm0, %v1350_v1  ;;  %34 = vst.msk [vmem:[#allocation2 + $0x28] sm:$0xff] %vm28_vm0, %v1350_v1  ;;  %1206 = vmatpush3.bf16.msra.mxu0 %v1293_v0  ;;  %v1301_v5 = vld [vmem:[%s1997_s2] sm:$0xff]   ;;  %v1298_v7 = vld [vmem:[%s1996_s1 + $0x28] sm:$0xff]  }
   0x4   :  { %35 = vst.msk [vmem:[#allocation2 + $0x30] sm:$0xff] %vm28_vm0, %v1350_v1  ;;  %36 = vst.msk [vmem:[#allocation2 + $0x38] sm:$0xff] %vm28_vm0, %v1350_v1  ;;  %1207 = vmatprep.subr.bf16.mxu0 %v1294_v2  ;;  %1221 = vmatprep.mubr.bf16.mxu0 %v1301_v5  ;;  %v1297_v6 = vld [vmem:[%s1996_s1 + $0x20] sm:$0xff]   ;;  %v1299_v8 = vld [vmem:[%s1996_s1 + $0x30] sm:$0xff]  }
   0x5   :  { %37 = vst.msk [vmem:[#allocation2 + $0x40] sm:$0xff] %vm28_vm0, %v1350_v1  ;;  %38 = vst.msk [vmem:[#allocation2 + $0x48] sm:$0xff] %vm28_vm0, %v1350_v1  ;;  %v1300_v9 = vld [vmem:[%s1996_s1 + $0x38] sm:$0xff]   ;;  %v1302_v10 = vld [vmem:[%s1997_s2 + $0x8] sm:$0xff]  }
   0x6   :  { %39 = vst.msk [vmem:[#allocation2 + $0x50] sm:$0xff] %vm28_vm0, %v1350_v1  ;;  %40 = vst.msk [vmem:[#allocation2 + $0x58] sm:$0xff] %vm28_vm0, %v1350_v1  ;;  %v1303_v11 = vld [vmem:[%s1997_s2 + $0x10] sm:$0xff]   ;;  %v1304_v12 = vld [vmem:[%s1997_s2 + $0x18] sm:$0xff]  }
   0x7   :  { %41 = vst.msk [vmem:[#allocation2 + $0x60] sm:$0xff] %vm28_vm0, %v1350_v1  ;;  %42 = vst.msk [vmem:[#allocation2 + $0x68] sm:$0xff] %vm28_vm0, %v1350_v1  ;;  %1208 = vmatpush3.bf16.msra.mxu0 %v1294_v2  ;;  %v1305_v13 = vld [vmem:[%s1997_s2 + $0x20] sm:$0xff]   ;;  %v1306_v14 = vld [vmem:[%s1997_s2 + $0x28] sm:$0xff]  }
   0x8   :  { %43 = vst.msk [vmem:[#allocation2 + $0x70] sm:$0xff] %vm28_vm0, %v1350_v1  ;;  %44 = vst.msk [vmem:[#allocation2 + $0x78] sm:$0xff] %vm28_vm0, %v1350_v1  ;;  %1209 = vmatprep.subr.bf16.mxu0 %v1295_v3  ;;  %v1307_v15 = vld [vmem:[%s1997_s2 + $0x30] sm:$0xff]   ;;  %v1308_v16 = vld [vmem:[%s1997_s2 + $0x38] sm:$0xff]  }
   0x9   :  { %v364_v17 = vld [vmem:[%s1998_s4] sm:$0xf]  ;;  %v1467_v22 = vld [vmem:[%s2000_s0 + $0x4] sm:$0xf]  ;;  %v1472_v23 = vld [vmem:[%s2000_s0 + $0x8] sm:$0xf] }
   0xa   :  { %1289 = vmatprep.subr.msk.bf16.mxu1 %vm389_vm1, %v364_v17  ;;  %v391_v18 = vsel %vm389_vm1, %v364_v17, 0  ;;  %v1309_v19 = vld [vmem:[%s1999_s3] sm:$0x3f]   ;;  %v1479_v25 = vld [vmem:[%s2000_s0 + $0xc] sm:$0xf]  ;;  %1031 = vrot.lane.b32.xlu1 %v1467_v22, %s1351_s17  ;;  %v47_v30 = vld [vmem:[#allocation2 + $0x10] sm:$0xff] }
   0xb   :  { %1210 = vmatpush3.bf16.msra.mxu0 %v1295_v3  ;;  %1238 = vmatpush3.bf16.msra.mxu1 %v391_v18  ;;  %v1457_v20 = vsel %vm561_vm2, %v1309_v19, 0  ;;  %v1462_v21 = vld [vmem:[%s2000_s0] sm:$0xf]  ;;  %v1123_v26 = vcombine.low %v1472_v23, %v1479_v25  ;;  %v1486_v27 = vld [vmem:[%s2000_s0 + $0x10] sm:$0xf]  ;;  %v48_v33 = vld [vmem:[#allocation2 + $0x18] sm:$0xff] }
   0xc   :  { %1211 = vmatprep.subr.bf16.mxu0 %v1296_v4  ;;  %1290 = vmatprep.subr.msk.bf16.mxu1 %vm561_vm2, %v1309_v19  ;;  %v1122_v24 = vcombine.low %v1462_v21, %v1467_v22  ;;  %v1491_v28 = vld [vmem:[%s2000_s0 + $0x14] sm:$0xf]  ;;  %v45_v31 = vld [vmem:[#allocation2] sm:$0xff]  ;;  %v46_v36 = vld [vmem:[#allocation2 + $0x8] sm:$0xff] }
   0xd   :  { %v1124_v29 = vcombine.low %v1486_v27, %v1491_v28  ;;  %1029 = vrot.lane.b32.xlu0 %v1462_v21, %s1351_s17  ;;  %v51_v42 = vld [vmem:[#allocation2 + $0x30] sm:$0xff]  ;;  %v49_v43 = vld [vmem:[#allocation2 + $0x20] sm:$0xff]  ;;  %v52_v45 = vld [vmem:[#allocation2 + $0x38] sm:$0xff] }
   0xe   :  { %1033 = vrot.lane.b32.xlu1 %v1472_v23, %s1351_s17  ;;  %v50_v48 = vld [vmem:[#allocation2 + $0x28] sm:$0xff]  ;;  %v55_v57 = vld [vmem:[#allocation2 + $0x50] sm:$0xff]  ;;  %v53_v60 = vld [vmem:[#allocation2 + $0x40] sm:$0xff] }
   0xf   :  { %1212 = vmatpush3.bf16.msra.mxu0 %v1296_v4  ;;  %v56_v63 = vld [vmem:[#allocation2 + $0x58] sm:$0xff]  ;;  %v54_v2 = vld [vmem:[#allocation2 + $0x48] sm:$0xff]  ;;  %v1557_v22 = vld [vmem:[%s2000_s0 + $0x20] sm:$0xf] }
  0x10   :  { %1213 = vmatprep.subr.bf16.mxu0 %v1297_v6  ;;  %v60_v17 = vld [vmem:[#allocation2 + $0x78] sm:$0xff]  ;;  %v1562_v23 = vld [vmem:[%s2000_s0 + $0x24] sm:$0xf] }
  0x11   :  { %1037 = vrot.lane.b32.xlu0 %v1486_v27, %s1351_s17  ;;  %v1552_v21 = vld [vmem:[%s2000_s0 + $0x1c] sm:$0xf]  ;;  %v1578_v27 = vld [vmem:[%s2000_s0 + $0x2c] sm:$0xf] }
  0x12   :  { %1035 = vrot.lane.b32.xlu1 %v1479_v25, %s1351_s17  ;;  %v1126_v25 = vcombine.low %v1557_v22, %v1562_v23 }
  0x13   :  { %1214 = vmatpush3.bf16.msra.mxu0 %v1297_v6 }
  0x14   :  { %1215 = vmatprep.subr.bf16.mxu0 %v1298_v7 }
  0x16   :  { %1039 = vrot.lane.b32.xlu1 %v1491_v28, %s1351_s17  ;;  %v1583_v28 = vld [vmem:[%s2000_s0 + $0x30] sm:$0xf] }
  0x17   :  { %1216 = vmatpush3.bf16.msra.mxu0 %v1298_v7 }
  0x18   :  { %1217 = vmatprep.subr.bf16.mxu0 %v1299_v8 }
  0x1b   :  { %1218 = vmatpush3.bf16.msra.mxu0 %v1299_v8 }
  0x1c   :  { %1219 = vmatprep.subr.bf16.mxu0 %v1300_v9 }
  0x1f   :  { %1220 = vmatpush3.bf16.msra.mxu0 %v1300_v9 }
  0x22   :  { %1222 = vmatmul.mubr.bf16.vlgmr.msra.gmra.mrb[0].mxu0 %v1302_v10 }
  0x23   :  { %1225 = vmatprep.mubr.bf16.mxu0 %v1303_v11  ;;  %v59_v11 = vld [vmem:[#allocation2 + $0x70] sm:$0xff] }
  0x2a   :  { %1226 = vmatmul.mubr.bf16.gmra.mrb[4].mxu0 %v1304_v12 }
  0x2b   :  { %1229 = vmatprep.mubr.bf16.mxu0 %v1305_v13 }
  0x32   :  { %1230 = vmatmul.mubr.bf16.gmra.mrb[8].mxu0 %v1306_v14  ;;  %v57_v14 = vld [vmem:[#allocation2 + $0x60] sm:$0xff] }
  0x33   :  { %1233 = vmatprep.mubr.bf16.mxu0 %v1307_v15 }
  0x3a   :  { %1234 = vmatmul.mubr.bf16.gmra.mrb[12].mxu0 %v1308_v16 }
  0xf5   :  { %v1223_v32 = vpop.f32.mrb[0].mxu0 }
  0xf6   :  { %v288_v34 = vadd.f32 %v1223_v32, %v47_v30  ;;  %v223_v35 = vpop.f32.mrb[1].mxu0 }
  0xf7   :  { %v286_v37 = vadd.f32 %v223_v35, %v45_v31  ;;  %v1224_v38 = vpop.f32.mrb[2].mxu0 }
  0xf8   :  { %305 = vst.msk [vmem:[#allocation2 + $0x10] sm:$0xff] %vm28_vm0, %v288_v34  ;;  %v289_v39 = vadd.f32 %v1224_v38, %v48_v33  ;;  %v226_v40 = vpop.f32.mrb[3].mxu0 }
  0xf9   :  { %303 = vst.msk [vmem:[#allocation2] sm:$0xff] %vm28_vm0, %v286_v37  ;;  %v287_v41 = vadd.f32 %v226_v40, %v46_v36 }
  0xfa   :  { %306 = vst.msk [vmem:[#allocation2 + $0x18] sm:$0xff] %vm28_vm0, %v289_v39 }
  0xfb   :  { %304 = vst.msk [vmem:[#allocation2 + $0x8] sm:$0xff] %vm28_vm0, %v287_v41 }
  0xfd   :  { %v1227_v44 = vpop.f32.mrb[4].mxu0 }
  0xfe   :  { %v292_v46 = vadd.f32 %v1227_v44, %v51_v42  ;;  %v239_v47 = vpop.f32.mrb[5].mxu0 }
  0xff   :  { %v290_v49 = vadd.f32 %v239_v47, %v49_v43  ;;  %v1228_v50 = vpop.f32.mrb[6].mxu0  ;;  %v342_v59 = vld [vmem:[#allocation2 + $0x10] sm:$0xff]  ;;  %v1547_v47 = vld [vmem:[%s2000_s0 + $0x18] sm:$0xf] }
 0x100   :  { %309 = vst.msk [vmem:[#allocation2 + $0x30] sm:$0xff] %vm28_vm0, %v292_v46  ;;  %v293_v51 = vadd.f32 %v1228_v50, %v52_v45  ;;  %v242_v52 = vpop.f32.mrb[7].mxu0  ;;  %v340_v55 = vld [vmem:[#allocation2] sm:$0xff]  ;;  %v1599_v50 = vld [vmem:[%s2000_s0 + $0x38] sm:$0xf] }
 0x101   :  { %307 = vst.msk [vmem:[#allocation2 + $0x20] sm:$0xff] %vm28_vm0, %v290_v49  ;;  %v291_v53 = vadd.f32 %v242_v52, %v50_v48  ;;  %v343_v54 = vld [vmem:[#allocation2 + $0x18] sm:$0xff] }
 0x102   :  { %310 = vst.msk [vmem:[#allocation2 + $0x38] sm:$0xff] %vm28_vm0, %v293_v51  ;;  %v341_v56 = vld [vmem:[#allocation2 + $0x8] sm:$0xff]  ;;  %v357_v61 = vpack.c.bf16 %v343_v54, %v342_v59  ;;  %v1604_v51 = vld [vmem:[%s2000_s0 + $0x3c] sm:$0xf] }
 0x103   :  { %308 = vst.msk [vmem:[#allocation2 + $0x28] sm:$0xff] %vm28_vm0, %v291_v53  ;;  %v356_v58 = vpack.c.bf16 %v341_v56, %v340_v55  ;;  %v1129_v52 = vcombine.low %v1599_v50, %v1604_v51  ;;  %v662_v53 = vlaneseq }
 0x105   :  { %v1231_v62 = vpop.f32.mrb[8].mxu0  ;;  %1239 = vmatprep.mubr.msk.bf16.mxu1 %vm28_vm0, %v356_v58  ;;  %v663_v54 = vshrl.u32 %v662_v53, 7 }
 0x106   :  { %v296_v0 = vadd.f32 %v1231_v62, %v55_v57  ;;  %v255_v1 = vpop.f32.mrb[9].mxu0  ;;  %1240 = vmatmul.mubr.msk.bf16.vlgmr.msra.gmra.mrb[0].mxu1 %vm28_vm0, %v357_v61  ;;  %v490_v57 = vld [vmem:[%s2001_s5] sm:$0x7] }
 0x107   :  { %v294_v3 = vadd.f32 %v255_v1, %v53_v60  ;;  %1256 = vmatpush3.bf16.msra.mxu1 %v1457_v20  ;;  %v1232_v4 = vpop.f32.mrb[10].mxu0  ;;  %v346_v13 = vld [vmem:[#allocation2 + $0x30] sm:$0xff]  ;;  %v58_v20 = vld [vmem:[#allocation2 + $0x68] sm:$0xff]  ;;  %v894_v55 = vsub.s32 1, %v663_v54  ;;  %v914_v56 = vsub.s32 2, %v663_v54  ;;  %v664_v60 = vsub.s32 0, %v663_v54 }
 0x108   :  { %313 = vst.msk [vmem:[#allocation2 + $0x50] sm:$0xff] %vm28_vm0, %v296_v0  ;;  %v297_v5 = vadd.f32 %v1232_v4, %v56_v63  ;;  %v258_v6 = vpop.f32.mrb[11].mxu0  ;;  %v344_v9 = vld [vmem:[#allocation2 + $0x20] sm:$0xff] }
 0x109   :  { %311 = vst.msk [vmem:[#allocation2 + $0x40] sm:$0xff] %vm28_vm0, %v294_v3  ;;  %v295_v7 = vadd.f32 %v258_v6, %v54_v2  ;;  %v347_v8 = vld [vmem:[#allocation2 + $0x38] sm:$0xff]  ;;  %v1612_v58 = vrot.slane %v490_v57, %v894_v55  ;;  %v1614_v59 = vrot.slane %v490_v57, %v914_v56  ;;  %v665_v61 = vrot.slane %v490_v57, %v664_v60  ;;  %v1684_v56 = vpop.permute.xlu1 %1031 }
 0x10a   :  { %314 = vst.msk [vmem:[#allocation2 + $0x58] sm:$0xff] %vm28_vm0, %v297_v5  ;;  %v345_v10 = vld [vmem:[#allocation2 + $0x28] sm:$0xff]  ;;  %v359_v15 = vpack.c.bf16 %v347_v8, %v346_v13 }
 0x10b   :  { %312 = vst.msk [vmem:[#allocation2 + $0x48] sm:$0xff] %vm28_vm0, %v295_v7  ;;  %v358_v12 = vpack.c.bf16 %v345_v10, %v344_v9 }
 0x10d   :  { %v1235_v16 = vpop.f32.mrb[12].mxu0  ;;  %1243 = vmatprep.mubr.msk.bf16.mxu1 %vm28_vm0, %v358_v12  ;;  %v1686_v57 = vpop.permute.xlu1 %1033 }
 0x10e   :  { %v300_v18 = vadd.f32 %v1235_v16, %v59_v11  ;;  %v271_v19 = vpop.f32.mrb[13].mxu0  ;;  %1244 = vmatmul.mubr.msk.bf16.gmra.mrb[4].mxu1 %vm28_vm0, %v359_v15 }
 0x10f   :  { %v298_v30 = vadd.f32 %v271_v19, %v57_v14  ;;  %v1236_v31 = vpop.f32.mrb[14].mxu0  ;;  %v350_v39 = vld [vmem:[#allocation2 + $0x50] sm:$0xff] }
 0x110   :  { %317 = vst.msk [vmem:[#allocation2 + $0x70] sm:$0xff] %vm28_vm0, %v300_v18  ;;  %v301_v32 = vadd.f32 %v1236_v31, %v60_v17  ;;  %v274_v33 = vpop.f32.mrb[15].mxu0  ;;  %v348_v36 = vld [vmem:[#allocation2 + $0x40] sm:$0xff] }
 0x111   :  { %315 = vst.msk [vmem:[#allocation2 + $0x60] sm:$0xff] %vm28_vm0, %v298_v30  ;;  %v299_v34 = vadd.f32 %v274_v33, %v58_v20  ;;  %v351_v35 = vld [vmem:[#allocation2 + $0x58] sm:$0xff]  ;;  %v1688_v60 = vpop.permute.xlu1 %1035 }
 0x112   :  { %318 = vst.msk [vmem:[#allocation2 + $0x78] sm:$0xff] %vm28_vm0, %v301_v32  ;;  %v349_v37 = vld [vmem:[#allocation2 + $0x48] sm:$0xff]  ;;  %v361_v40 = vpack.c.bf16 %v351_v35, %v350_v39 }
 0x113   :  { %316 = vst.msk [vmem:[#allocation2 + $0x68] sm:$0xff] %vm28_vm0, %v299_v34  ;;  %v360_v38 = vpack.c.bf16 %v349_v37, %v348_v36 }
 0x115   :  { %1247 = vmatprep.mubr.msk.bf16.mxu1 %vm28_vm0, %v360_v38 }
 0x116   :  { %1248 = vmatmul.mubr.msk.bf16.gmra.mrb[8].mxu1 %vm28_vm0, %v361_v40 }
 0x117   :  { %v354_v45 = vld [vmem:[#allocation2 + $0x70] sm:$0xff] }
 0x118   :  { %v352_v42 = vld [vmem:[#allocation2 + $0x60] sm:$0xff] }
 0x119   :  { %v355_v41 = vld [vmem:[#allocation2 + $0x78] sm:$0xff] }
 0x11a   :  { %v353_v43 = vld [vmem:[#allocation2 + $0x68] sm:$0xff]  ;;  %v363_v46 = vpack.c.bf16 %v355_v41, %v354_v45 }
 0x11b   :  { %v362_v44 = vpack.c.bf16 %v353_v43, %v352_v42 }
 0x11d   :  { %1251 = vmatprep.mubr.msk.bf16.mxu1 %vm28_vm0, %v362_v44 }
 0x11e   :  { %1252 = vmatmul.mubr.msk.bf16.gmra.mrb[12].mxu1 %vm28_vm0, %v363_v46 }
 0x11f   :  { %1257 = vmatprep.mubr.msk.bf16.mxu1 %vm536_vm3, %v1122_v24  ;;  %v1125_v24 = vcombine.low %v1547_v47, %v1552_v21 }
 0x126   :  { %1258 = vmatmul.mubr.msk.bf16.vlgmr.msra.gmra.mrb[0].mxu1 %vm536_vm3, %v1123_v26  ;;  %v1573_v26 = vld [vmem:[%s2000_s0 + $0x28] sm:$0xf] }
 0x127   :  { %1261 = vmatprep.mubr.msk.bf16.mxu1 %vm536_vm3, %v1124_v29  ;;  %v1588_v29 = vld [vmem:[%s2000_s0 + $0x34] sm:$0xf]  ;;  %v1127_v48 = vcombine.low %v1573_v26, %v1578_v27 }
 0x128   :  { %v1128_v49 = vcombine.low %v1583_v28, %v1588_v29 }
 0x12e   :  { %1262 = vmatmul.mubr.msk.bf16.gmra.mrb[4].mxu1 %vm536_vm3, %v1125_v24 }
 0x12f   :  { %1265 = vmatprep.mubr.msk.bf16.mxu1 %vm536_vm3, %v1126_v25 }
 0x136   :  { %1266 = vmatmul.mubr.msk.bf16.gmra.mrb[8].mxu1 %vm536_vm3, %v1127_v48 }
 0x137   :  { %1269 = vmatprep.mubr.msk.bf16.mxu1 %vm536_vm3, %v1128_v49 }
 0x13e   :  { %1270 = vmatmul.mubr.msk.bf16.gmra.mrb[12].mxu1 %vm536_vm3, %v1129_v52 }
 0x1f9   :  { %v1259_v62 = vpop.f32.mrb[0].mxu1 }
 0x1fa   :  { %v1616_v63 = vadd.f32 %v1259_v62, %v665_v61  ;;  %v599_v0 = vpop.f32.mrb[1].mxu1 }
 0x1fb   :  { %v1618_v1 = vadd.f32 %v665_v61, %v599_v0  ;;  %v1260_v2 = vpop.f32.mrb[2].mxu1 }
 0x1fc   :  { %v1620_v3 = vadd.f32 %v1260_v2, %v665_v61  ;;  %v602_v4 = vpop.f32.mrb[3].mxu1  ;;  %v689_v5 = vsel %vm682_vm4, %v1616_v63, 0.0 }
 0x1fd   :  { %v1624_v6 = vadd.f32 %v665_v61, %v602_v4  ;;  %690 = vadd.xlane.f32.xlu1 %v689_v5  ;;  %v683_v7 = vsel %vm682_vm4, %v1618_v1, 0.0 }
 0x1fe   :  { %684 = vadd.xlane.f32.xlu0 %v683_v7  ;;  %v692_v8 = vsel %vm682_vm4, %v1620_v3, 0.0 }
 0x1ff   :  { %v686_v10 = vsel %vm682_vm4, %v1624_v6, 0.0 }
 0x201   :  { %693 = vadd.xlane.f32.xlu1 %v692_v8  ;;  %v1263_v9 = vpop.f32.mrb[4].mxu1 }
 0x202   :  { %v1632_v11 = vadd.f32 %v1263_v9, %v665_v61  ;;  %687 = vadd.xlane.f32.xlu0 %v686_v10  ;;  %v615_v12 = vpop.f32.mrb[5].mxu1 }
 0x203   :  { %v1264_v13 = vpop.f32.mrb[6].mxu1  ;;  %v1638_v17 = vadd.f32 %v665_v61, %v615_v12 }
 0x204   :  { %v1634_v14 = vadd.f32 %v1264_v13, %v665_v61  ;;  %v618_v15 = vpop.f32.mrb[7].mxu1  ;;  %v701_v16 = vsel %vm682_vm4, %v1632_v11, 0.0 }
 0x205   :  { %v1640_v18 = vadd.f32 %v665_v61, %v618_v15  ;;  %v695_v30 = vsel %vm682_vm4, %v1638_v17, 0.0 }
 0x206   :  { %702 = vadd.xlane.f32.xlu0 %v701_v16  ;;  %v704_v19 = vsel %vm682_vm4, %v1634_v14, 0.0 }
 0x207   :  { %705 = vadd.xlane.f32.xlu1 %v704_v19  ;;  %v698_v33 = vsel %vm682_vm4, %v1640_v18, 0.0 }
 0x209   :  { %v1267_v20 = vpop.f32.mrb[8].mxu1 }
 0x20a   :  { %v1646_v31 = vadd.f32 %v1267_v20, %v665_v61  ;;  %696 = vadd.xlane.f32.xlu0 %v695_v30  ;;  %v631_v32 = vpop.f32.mrb[9].mxu1 }
 0x20b   :  { %699 = vadd.xlane.f32.xlu1 %v698_v33  ;;  %v1268_v34 = vpop.f32.mrb[10].mxu1  ;;  %v1654_v38 = vadd.f32 %v665_v61, %v631_v32 }
 0x20c   :  { %v1650_v35 = vadd.f32 %v1268_v34, %v665_v61  ;;  %v634_v36 = vpop.f32.mrb[11].mxu1  ;;  %v713_v37 = vsel %vm682_vm4, %v1646_v31, 0.0 }
 0x20d   :  { %v1656_v39 = vadd.f32 %v665_v61, %v634_v36  ;;  %v707_v42 = vsel %vm682_vm4, %v1654_v38, 0.0 }
 0x20e   :  { %714 = vadd.xlane.f32.xlu0 %v713_v37  ;;  %v716_v40 = vsel %vm682_vm4, %v1650_v35, 0.0 }
 0x20f   :  { %717 = vadd.xlane.f32.xlu1 %v716_v40  ;;  %v710_v45 = vsel %vm682_vm4, %v1656_v39, 0.0 }
 0x211   :  { %v1271_v41 = vpop.f32.mrb[12].mxu1 }
 0x212   :  { %v1662_v43 = vadd.f32 %v1271_v41, %v665_v61  ;;  %708 = vadd.xlane.f32.xlu0 %v707_v42  ;;  %v647_v44 = vpop.f32.mrb[13].mxu1 }
 0x213   :  { %711 = vadd.xlane.f32.xlu1 %v710_v45  ;;  %v1272_v46 = vpop.f32.mrb[14].mxu1  ;;  %v1670_v49 = vadd.f32 %v665_v61, %v647_v44 }
 0x214   :  { %v1666_v24 = vadd.f32 %v1272_v46, %v665_v61  ;;  %v650_v25 = vpop.f32.mrb[15].mxu1  ;;  %v725_v48 = vsel %vm682_vm4, %v1662_v43, 0.0 }
 0x215   :  { %v1672_v52 = vadd.f32 %v665_v61, %v650_v25  ;;  %v719_v53 = vsel %vm682_vm4, %v1670_v49, 0.0  ;;  %v1690_v61 = vpop.permute.xlu0 %1029 }
 0x216   :  { %726 = vadd.xlane.f32.xlu0 %v725_v48  ;;  %v728_v54 = vsel %vm682_vm4, %v1666_v24, 0.0 }
 0x217   :  { %v722_v55 = vsel %vm682_vm4, %v1672_v52, 0.0 }
 0x219   :  { %v1694_v62 = vpop.permute.xlu0 %1037 }
 0x21a   :  { %720 = vadd.xlane.f32.xlu0 %v719_v53 }
 0x224   :  { %1043 = vrot.lane.b32.xlu1 %v1552_v21, %s1351_s17  ;;  %v1692_v21 = vpop.permute.xlu1 %1039 }
 0x230   :  { %1041 = vrot.lane.b32.xlu0 %v1547_v47, %s1351_s17 }
 0x248   :  { %729 = vadd.xlane.f32.xlu1 %v728_v54 }
 0x24c   :  { %723 = vadd.xlane.f32.xlu1 %v722_v55 }
 0x28a   :  { %v691_v47 = vpop.xlane.xlu1 %690 }
 0x28b   :  { %v734_v0 = vmul.f32 0.03125, %v691_v47  ;;  %v685_v2 = vpop.xlane.xlu0 %684 }
 0x28c   :  { %v732_v4 = vmul.f32 0.03125, %v685_v2 }
 0x28d   :  { %v1697_v5 = vsub.f32 %v1616_v63, %v734_v0 }
 0x28e   :  { %v1700_v7 = vsub.f32 %v1618_v1, %v732_v4  ;;  %v694_v8 = vpop.xlane.xlu1 %693 }
 0x28f   :  { %v735_v9 = vmul.f32 0.03125, %v694_v8  ;;  %v688_v10 = vpop.xlane.xlu0 %687  ;;  %v766_v12 = vmul.f32 %v1697_v5, %v1697_v5 }
 0x290   :  { %v733_v13 = vmul.f32 0.03125, %v688_v10  ;;  %v764_v19 = vmul.f32 %v1700_v7, %v1700_v7 }
 0x291   :  { %v1705_v15 = vsub.f32 %v1620_v3, %v735_v9  ;;  %v786_v16 = vsel %vm682_vm4, %v766_v12, 0.0 }
 0x292   :  { %v1711_v63 = vsub.f32 %v1624_v6, %v733_v13  ;;  %787 = vadd.xlane.f32.xlu0 %v786_v16  ;;  %v780_v34 = vsel %vm682_vm4, %v764_v19, 0.0 }
 0x293   :  { %v703_v1 = vpop.xlane.xlu0 %702  ;;  %v767_v20 = vmul.f32 %v1705_v15, %v1705_v15 }
 0x294   :  { %v738_v30 = vmul.f32 0.03125, %v703_v1  ;;  %v706_v32 = vpop.xlane.xlu1 %705  ;;  %v765_v36 = vmul.f32 %v1711_v63, %v1711_v63 }
 0x295   :  { %v739_v33 = vmul.f32 0.03125, %v706_v32  ;;  %v789_v3 = vsel %vm682_vm4, %v767_v20, 0.0 }
 0x296   :  { %v1720_v37 = vsub.f32 %v1632_v11, %v738_v30  ;;  %781 = vadd.xlane.f32.xlu0 %v780_v34  ;;  %790 = vadd.xlane.f32.xlu1 %v789_v3  ;;  %v783_v46 = vsel %vm682_vm4, %v765_v36, 0.0 }
 0x297   :  { %v1723_v6 = vsub.f32 %v1634_v14, %v739_v33  ;;  %v697_v40 = vpop.xlane.xlu0 %696 }
 0x298   :  { %v736_v41 = vmul.f32 0.03125, %v697_v40  ;;  %v700_v42 = vpop.xlane.xlu1 %699  ;;  %v770_v44 = vmul.f32 %v1720_v37, %v1720_v37 }
 0x299   :  { %v737_v45 = vmul.f32 0.03125, %v700_v42  ;;  %v771_v25 = vmul.f32 %v1723_v6, %v1723_v6 }
 0x29a   :  { %v1731_v11 = vsub.f32 %v1638_v17, %v736_v41  ;;  %784 = vadd.xlane.f32.xlu1 %v783_v46  ;;  %v798_v48 = vsel %vm682_vm4, %v770_v44, 0.0 }
 0x29b   :  { %v1735_v14 = vsub.f32 %v1640_v18, %v737_v45  ;;  %v715_v53 = vpop.xlane.xlu0 %714  ;;  %799 = vadd.xlane.f32.xlu0 %v798_v48  ;;  %v801_v2 = vsel %vm682_vm4, %v771_v25, 0.0 }
 0x29c   :  { %v742_v54 = vmul.f32 0.03125, %v715_v53  ;;  %v718_v55 = vpop.xlane.xlu1 %717  ;;  %v768_v47 = vmul.f32 %v1731_v11, %v1731_v11 }
 0x29d   :  { %v743_v0 = vmul.f32 0.03125, %v718_v55  ;;  %v769_v17 = vmul.f32 %v1735_v14, %v1735_v14 }
 0x29e   :  { %v1743_v4 = vsub.f32 %v1646_v31, %v742_v54  ;;  %802 = vadd.xlane.f32.xlu1 %v801_v2  ;;  %v792_v18 = vsel %vm682_vm4, %v768_v47, 0.0 }
 0x29f   :  { %v1747_v8 = vsub.f32 %v1650_v35, %v743_v0  ;;  %v709_v9 = vpop.xlane.xlu0 %708  ;;  %793 = vadd.xlane.f32.xlu0 %v792_v18  ;;  %v795_v19 = vsel %vm682_vm4, %v769_v17, 0.0 }
 0x2a0   :  { %v740_v10 = vmul.f32 0.03125, %v709_v9  ;;  %v712_v12 = vpop.xlane.xlu1 %711  ;;  %v774_v13 = vmul.f32 %v1743_v4, %v1743_v4 }
 0x2a1   :  { %v741_v16 = vmul.f32 0.03125, %v712_v12  ;;  %v775_v31 = vmul.f32 %v1747_v8, %v1747_v8 }
 0x2a2   :  { %v1755_v1 = vsub.f32 %v1654_v38, %v740_v10  ;;  %796 = vadd.xlane.f32.xlu1 %v795_v19  ;;  %v810_v35 = vsel %vm682_vm4, %v774_v13, 0.0 }
 0x2a3   :  { %v1759_v20 = vsub.f32 %v1656_v39, %v741_v16  ;;  %v727_v30 = vpop.xlane.xlu0 %726  ;;  %811 = vadd.xlane.f32.xlu0 %v810_v35  ;;  %v813_v34 = vsel %vm682_vm4, %v775_v31, 0.0 }
 0x2a4   :  { %v746_v32 = vmul.f32 0.03125, %v727_v30  ;;  %v772_v33 = vmul.f32 %v1755_v1, %v1755_v1 }
 0x2a5   :  { %v773_v3 = vmul.f32 %v1759_v20, %v1759_v20 }
 0x2a6   :  { %v1767_v38 = vsub.f32 %v1662_v43, %v746_v32  ;;  %814 = vadd.xlane.f32.xlu1 %v813_v34  ;;  %v804_v36 = vsel %vm682_vm4, %v772_v33, 0.0 }
 0x2a7   :  { %805 = vadd.xlane.f32.xlu0 %v804_v36  ;;  %v721_v39 = vpop.xlane.xlu0 %720  ;;  %v807_v42 = vsel %vm682_vm4, %v773_v3, 0.0 }
 0x2a8   :  { %v744_v40 = vmul.f32 0.03125, %v721_v39  ;;  %v778_v41 = vmul.f32 %v1767_v38, %v1767_v38 }
 0x2aa   :  { %v1774_v44 = vsub.f32 %v1670_v49, %v744_v40  ;;  %808 = vadd.xlane.f32.xlu1 %v807_v42  ;;  %v822_v45 = vsel %vm682_vm4, %v778_v41, 0.0  ;;  %v1790_v49 = vpop.permute.xlu1 %1043 }
 0x2ab   :  { %823 = vadd.xlane.f32.xlu0 %v822_v45 }
 0x2ac   :  { %v776_v43 = vmul.f32 %v1774_v44, %v1774_v44 }
 0x2ae   :  { %v816_v46 = vsel %vm682_vm4, %v776_v43, 0.0 }
 0x2af   :  { %817 = vadd.xlane.f32.xlu0 %v816_v46 }
 0x2bb   :  { %1047 = vrot.lane.b32.xlu1 %v1562_v23, %s1351_s17 }
 0x2bf   :  { %1051 = vrot.lane.b32.xlu1 %v1578_v27, %s1351_s17 }
 0x2c5   :  { %1045 = vrot.lane.b32.xlu0 %v1557_v22, %s1351_s17 }
 0x2c9   :  { %1049 = vrot.lane.b32.xlu0 %v1573_v26, %s1351_s17 }
 0x2cd   :  { %1053 = vrot.lane.b32.xlu0 %v1583_v28, %s1351_s17 }
 0x2d1   :  { %1057 = vrot.lane.b32.xlu0 %v1599_v50, %s1351_s17 }
 0x2d5   :  { %v730_v25 = vpop.xlane.xlu1 %729 }
 0x2d6   :  { %v747_v48 = vmul.f32 0.03125, %v730_v25 }
 0x2d8   :  { %v1795_v53 = vsub.f32 %v1666_v24, %v747_v48  ;;  %v1810_v24 = vpop.permute.xlu0 %1041 }
 0x2d9   :  { %v724_v23 = vpop.xlane.xlu1 %723 }
 0x2da   :  { %v745_v27 = vmul.f32 0.03125, %v724_v23  ;;  %v779_v26 = vmul.f32 %v1795_v53, %v1795_v53 }
 0x2dc   :  { %v1798_v22 = vsub.f32 %v1672_v52, %v745_v27  ;;  %v825_v28 = vsel %vm682_vm4, %v779_v26, 0.0 }
 0x2de   :  { %v777_v54 = vmul.f32 %v1798_v22, %v1798_v22 }
 0x2e0   :  { %v819_v50 = vsel %vm682_vm4, %v777_v54, 0.0 }
 0x2e3   :  { %826 = vadd.xlane.f32.xlu1 %v825_v28 }
 0x2e7   :  { %820 = vadd.xlane.f32.xlu1 %v819_v50 }
 0x2f8   :  { %1055 = vrot.lane.b32.xlu1 %v1588_v29, %s1351_s17 }
 0x2fc   :  { %1059 = vrot.lane.b32.xlu1 %v1604_v51, %s1351_s17 }
 0x31f   :  { %v788_v52 = vpop.xlane.xlu0 %787 }
 0x320   :  { %v830_v55 = vmul.f32 0.03125, %v788_v52 }
 0x322   :  { %v846_v47 = vadd.f32 1e-05, %v830_v55 }
 0x323   :  { %v782_v0 = vpop.xlane.xlu0 %781  ;;  %v791_v2 = vpop.xlane.xlu1 %790 }
 0x324   :  { %1318 = vrsqrt.f32 %v846_v47  ;;  %v828_v17 = vmul.f32 0.03125, %v782_v0  ;;  %v831_v18 = vmul.f32 0.03125, %v791_v2 }
 0x326   :  { %v844_v9 = vadd.f32 1e-05, %v828_v17  ;;  %v847_v10 = vadd.f32 1e-05, %v831_v18 }
 0x327   :  { %v785_v12 = vpop.xlane.xlu1 %784 }
 0x328   :  { %1320 = vrsqrt.f32 %v844_v9  ;;  %v829_v13 = vmul.f32 0.03125, %v785_v12  ;;  %v800_v16 = vpop.xlane.xlu0 %799 }
 0x329   :  { %1322 = vrsqrt.f32 %v847_v10  ;;  %v834_v29 = vmul.f32 0.03125, %v800_v16 }
 0x32a   :  { %v845_v19 = vadd.f32 1e-05, %v829_v13 }
 0x32b   :  { %v850_v51 = vadd.f32 1e-05, %v834_v29  ;;  %v803_v31 = vpop.xlane.xlu1 %802 }
 0x32c   :  { %1324 = vrsqrt.f32 %v845_v19  ;;  %v835_v35 = vmul.f32 0.03125, %v803_v31  ;;  %v794_v30 = vpop.xlane.xlu0 %793 }
 0x32d   :  { %1326 = vrsqrt.f32 %v850_v51  ;;  %v832_v32 = vmul.f32 0.03125, %v794_v30 }
 0x32e   :  { %v1319_v33 = vpop.eup %1318  ;;  %v851_v34 = vadd.f32 1e-05, %v835_v35 }
 0x32f   :  { %v878_v3 = vmul.f32 %v1319_v33, %v1697_v5  ;;  %v848_v36 = vadd.f32 1e-05, %v832_v32  ;;  %v797_v39 = vpop.xlane.xlu1 %796 }
 0x330   :  { %1328 = vrsqrt.f32 %v851_v34  ;;  %v833_v40 = vmul.f32 0.03125, %v797_v39  ;;  %v812_v41 = vpop.xlane.xlu0 %811 }
 0x331   :  { %v898_v42 = vmul.f32 %v1612_v58, %v878_v3  ;;  %1330 = vrsqrt.f32 %v848_v36  ;;  %v838_v45 = vmul.f32 0.03125, %v812_v41 }
 0x332   :  { %v1321_v43 = vpop.eup %1320  ;;  %v849_v46 = vadd.f32 1e-05, %v833_v40 }
 0x333   :  { %v1323_v25 = vpop.eup %1322  ;;  %v918_v48 = vadd.f32 %v1614_v59, %v898_v42  ;;  %v876_v23 = vmul.f32 %v1321_v43, %v1700_v7  ;;  %v854_v27 = vadd.f32 1e-05, %v838_v45  ;;  %v815_v26 = vpop.xlane.xlu1 %814 }
 0x334   :  { %v879_v5 = vmul.f32 %v1323_v25, %v1705_v15  ;;  %1332 = vrsqrt.f32 %v849_v46  ;;  %v839_v28 = vmul.f32 0.03125, %v815_v26  ;;  %v806_v54 = vpop.xlane.xlu0 %805 }
 0x335   :  { %v934_v50 = vmax.f32 %v918_v48, 0.0  ;;  %v896_v52 = vmul.f32 %v1612_v58, %v876_v23  ;;  %1334 = vrsqrt.f32 %v854_v27  ;;  %v836_v55 = vmul.f32 0.03125, %v806_v54 }
 0x336   :  { %v1325_v47 = vpop.eup %1324  ;;  %v899_v0 = vmul.f32 %v1612_v58, %v879_v5  ;;  %v855_v2 = vadd.f32 1e-05, %v839_v28 }
 0x337   :  { %v1327_v17 = vpop.eup %1326  ;;  %v1157_v7 = vpack.c.bf16 %v934_v50, %v934_v50  ;;  %v916_v18 = vadd.f32 %v1614_v59, %v896_v52  ;;  %v877_v15 = vmul.f32 %v1325_v47, %v1711_v63  ;;  %v852_v9 = vadd.f32 1e-05, %v836_v55  ;;  %v809_v10 = vpop.xlane.xlu1 %808 }
 0x338   :  { %v919_v12 = vadd.f32 %v1614_v59, %v899_v0  ;;  %v882_v13 = vmul.f32 %v1327_v17, %v1720_v37  ;;  %1336 = vrsqrt.f32 %v855_v2  ;;  %v837_v16 = vmul.f32 0.03125, %v809_v10  ;;  %v824_v29 = vpop.xlane.xlu0 %823 }
 0x339   :  { %1015 = vst.msk [vmem:[%s2002_s6 + $0x8] sm:$0xf] %vm1012_vm5, %v1157_v7  ;;  %v932_v19 = vmax.f32 %v916_v18, 0.0  ;;  %v897_v51 = vmul.f32 %v1612_v58, %v877_v15  ;;  %1338 = vrsqrt.f32 %v852_v9  ;;  %v842_v31 = vmul.f32 0.03125, %v824_v29 }
 0x33a   :  { %v1329_v63 = vpop.eup %1328  ;;  %1080 = vst.msk [vmem:[%s2002_s6 + $0x8] sm:$0xf] %vm1077_vm6, %v1686_v57  ;;  %v935_v37 = vmax.f32 %v919_v12, 0.0  ;;  %v902_v35 = vmul.f32 %v1612_v58, %v882_v13  ;;  %v853_v30 = vadd.f32 1e-05, %v837_v16 }
 0x33b   :  { %v1331_v32 = vpop.eup %1330  ;;  %v1155_v33 = vpack.c.bf16 %v932_v19, %v932_v19  ;;  %v917_v34 = vadd.f32 %v1614_v59, %v897_v51  ;;  %v883_v3 = vmul.f32 %v1329_v63, %v1723_v6  ;;  %v858_v36 = vadd.f32 1e-05, %v842_v31  ;;  %v1048_v16 = vpop.permute.xlu1 %1047 }
 0x33c   :  { %v1158_v39 = vpack.c.bf16 %v935_v37, %v935_v37  ;;  %v922_v40 = vadd.f32 %v1614_v59, %v902_v35  ;;  %v880_v41 = vmul.f32 %v1331_v32, %v1731_v11  ;;  %1340 = vrsqrt.f32 %v853_v30  ;;  %v818_v42 = vpop.xlane.xlu0 %817 }
 0x33d   :  { %1013 = vst.msk [vmem:[%s2002_s6] sm:$0xf] %vm1012_vm5, %v1155_v33  ;;  %v933_v57 = vmax.f32 %v917_v34, 0.0  ;;  %v903_v45 = vmul.f32 %v1612_v58, %v883_v3  ;;  %1342 = vrsqrt.f32 %v858_v36  ;;  %v840_v43 = vmul.f32 0.03125, %v818_v42 }
 0x33e   :  { %v1333_v46 = vpop.eup %1332  ;;  %1078 = vst.msk [vmem:[%s2002_s6] sm:$0xf] %vm1077_vm6, %v1690_v61  ;;  %v938_v6 = vmax.f32 %v922_v40, 0.0  ;;  %v900_v11 = vmul.f32 %v1612_v58, %v880_v41 }
 0x33f   :  { %1016 = vst.msk [vmem:[%s2002_s6 + $0xc] sm:$0xf] %vm1012_vm5, %v1158_v39  ;;  %v1335_v25 = vpop.eup %1334  ;;  %v1156_v48 = vpack.c.bf16 %v933_v57, %v933_v57  ;;  %v923_v23 = vadd.f32 %v1614_v59, %v903_v45  ;;  %v881_v61 = vmul.f32 %v1333_v46, %v1735_v14  ;;  %v856_v27 = vadd.f32 1e-05, %v840_v43  ;;  %v1052_v3 = vpop.permute.xlu1 %1051 }
 0x340   :  { %1081 = vst.msk [vmem:[%s2002_s6 + $0xc] sm:$0xf] %vm1077_vm6, %v1688_v60  ;;  %v1161_v26 = vpack.c.bf16 %v938_v6, %v938_v6  ;;  %v920_v5 = vadd.f32 %v1614_v59, %v900_v11  ;;  %v886_v28 = vmul.f32 %v1335_v25, %v1743_v4  ;;  %v1046_v54 = vpop.permute.xlu0 %1045 }
 0x341   :  { %1014 = vst.msk [vmem:[%s2002_s6 + $0x4] sm:$0xf] %vm1012_vm5, %v1156_v48  ;;  %v939_v50 = vmax.f32 %v923_v23, 0.0  ;;  %v901_v60 = vmul.f32 %v1612_v58, %v881_v61  ;;  %1344 = vrsqrt.f32 %v856_v27 }
 0x342   :  { %v1337_v52 = vpop.eup %1336  ;;  %1079 = vst.msk [vmem:[%s2002_s6 + $0x4] sm:$0xf] %vm1077_vm6, %v1684_v56  ;;  %v936_v14 = vmax.f32 %v920_v5, 0.0  ;;  %v906_v4 = vmul.f32 %v1612_v58, %v886_v28 }
 0x343   :  { %1019 = vst.msk [vmem:[%s2002_s6 + $0x18] sm:$0xf] %vm1012_vm5, %v1161_v26  ;;  %v1339_v55 = vpop.eup %1338  ;;  %v1162_v47 = vpack.c.bf16 %v939_v50, %v939_v50  ;;  %v921_v0 = vadd.f32 %v1614_v59, %v901_v60  ;;  %v887_v56 = vmul.f32 %v1337_v52, %v1747_v8 }
 0x344   :  { %1084 = vst.msk [vmem:[%s2002_s6 + $0x18] sm:$0xf] %vm1077_vm6, %v1810_v24  ;;  %v1159_v2 = vpack.c.bf16 %v936_v14, %v936_v14  ;;  %v884_v17 = vmul.f32 %v1339_v55, %v1755_v1  ;;  %v926_v7 = vadd.f32 %v1614_v59, %v906_v4  ;;  %v1050_v18 = vpop.permute.xlu0 %1049 }
 0x345   :  { %1020 = vst.msk [vmem:[%s2002_s6 + $0x1c] sm:$0xf] %vm1012_vm5, %v1162_v47  ;;  %v937_v15 = vmax.f32 %v921_v0, 0.0  ;;  %v907_v9 = vmul.f32 %v1612_v58, %v887_v56 }
 0x346   :  { %v1341_v24 = vpop.eup %1340  ;;  %1085 = vst.msk [vmem:[%s2002_s6 + $0x1c] sm:$0xf] %vm1077_vm6, %v1790_v49  ;;  %v904_v8 = vmul.f32 %v1612_v58, %v884_v17  ;;  %v942_v1 = vmax.f32 %v926_v7, 0.0 }
 0x347   :  { %1017 = vst.msk [vmem:[%s2002_s6 + $0x10] sm:$0xf] %vm1012_vm5, %v1159_v2  ;;  %v1343_v10 = vpop.eup %1342  ;;  %v1160_v12 = vpack.c.bf16 %v937_v15, %v937_v15  ;;  %v885_v13 = vmul.f32 %v1341_v24, %v1759_v20  ;;  %v927_v49 = vadd.f32 %v1614_v59, %v907_v9 }
 0x348   :  { %1082 = vst.msk [vmem:[%s2002_s6 + $0x10] sm:$0xf] %vm1077_vm6, %v1694_v62  ;;  %v890_v29 = vmul.f32 %v1343_v10, %v1767_v38  ;;  %v924_v19 = vadd.f32 %v1614_v59, %v904_v8  ;;  %v1165_v51 = vpack.c.bf16 %v942_v1, %v942_v1  ;;  %v1054_v38 = vpop.permute.xlu0 %1053 }
 0x349   :  { %1018 = vst.msk [vmem:[%s2002_s6 + $0x14] sm:$0xf] %vm1012_vm5, %v1160_v12  ;;  %v905_v31 = vmul.f32 %v1612_v58, %v885_v13  ;;  %v943_v63 = vmax.f32 %v927_v49, 0.0 }
 0x34a   :  { %1083 = vst.msk [vmem:[%s2002_s6 + $0x14] sm:$0xf] %vm1077_vm6, %v1692_v21  ;;  %v910_v62 = vmul.f32 %v1612_v58, %v890_v29  ;;  %v940_v20 = vmax.f32 %v924_v19, 0.0 }
 0x34b   :  { %1023 = vst.msk [vmem:[%s2002_s6 + $0x28] sm:$0xf] %vm1012_vm5, %v1165_v51  ;;  %v1345_v37 = vpop.eup %1344  ;;  %v925_v35 = vadd.f32 %v1614_v59, %v905_v31  ;;  %v1166_v30 = vpack.c.bf16 %v943_v63, %v943_v63 }
 0x34c   :  { %1088 = vst.msk [vmem:[%s2002_s6 + $0x28] sm:$0xf] %vm1077_vm6, %v1050_v18  ;;  %v888_v21 = vmul.f32 %v1345_v37, %v1774_v44  ;;  %v1163_v32 = vpack.c.bf16 %v940_v20, %v940_v20  ;;  %v930_v33 = vadd.f32 %v1614_v59, %v910_v62  ;;  %v1058_v42 = vpop.permute.xlu0 %1057 }
 0x34d   :  { %v941_v34 = vmax.f32 %v925_v35, 0.0  ;;  %1024 = vst.msk [vmem:[%s2002_s6 + $0x2c] sm:$0xf] %vm1012_vm5, %v1166_v30 }
 0x34e   :  { %v908_v36 = vmul.f32 %v1612_v58, %v888_v21  ;;  %1089 = vst.msk [vmem:[%s2002_s6 + $0x2c] sm:$0xf] %vm1077_vm6, %v1052_v3  ;;  %v946_v44 = vmax.f32 %v930_v33, 0.0 }
 0x34f   :  { %1021 = vst.msk [vmem:[%s2002_s6 + $0x20] sm:$0xf] %vm1012_vm5, %v1163_v32  ;;  %v1164_v39 = vpack.c.bf16 %v941_v34, %v941_v34 }
 0x350   :  { %1086 = vst.msk [vmem:[%s2002_s6 + $0x20] sm:$0xf] %vm1077_vm6, %v1046_v54  ;;  %v928_v40 = vadd.f32 %v1614_v59, %v908_v36  ;;  %v1169_v41 = vpack.c.bf16 %v946_v44, %v946_v44 }
 0x351   :  { %1022 = vst.msk [vmem:[%s2002_s6 + $0x24] sm:$0xf] %vm1012_vm5, %v1164_v39 }
 0x352   :  { %1087 = vst.msk [vmem:[%s2002_s6 + $0x24] sm:$0xf] %vm1077_vm6, %v1048_v16  ;;  %v944_v57 = vmax.f32 %v928_v40, 0.0 }
 0x353   :  { %1027 = vst.msk [vmem:[%s2002_s6 + $0x38] sm:$0xf] %vm1012_vm5, %v1169_v41 }
 0x354   :  { %1092 = vst.msk [vmem:[%s2002_s6 + $0x38] sm:$0xf] %vm1077_vm6, %v1058_v42  ;;  %v1167_v45 = vpack.c.bf16 %v944_v57, %v944_v57 }
 0x356   :  { %1025 = vst.msk [vmem:[%s2002_s6 + $0x30] sm:$0xf] %vm1012_vm5, %v1167_v45 }
 0x357   :  { %1090 = vst.msk [vmem:[%s2002_s6 + $0x30] sm:$0xf] %vm1077_vm6, %v1054_v38 }
 0x370   :  { %v827_v43 = vpop.xlane.xlu1 %826 }
 0x371   :  { %v843_v46 = vmul.f32 0.03125, %v827_v43 }
 0x373   :  { %v859_v6 = vadd.f32 1e-05, %v843_v46 }
 0x374   :  { %v821_v11 = vpop.xlane.xlu1 %820 }
 0x375   :  { %1346 = vrsqrt.f32 %v859_v6  ;;  %v841_v25 = vmul.f32 0.03125, %v821_v11 }
 0x377   :  { %v857_v48 = vadd.f32 1e-05, %v841_v25 }
 0x378   :  { %v1056_v26 = vpop.permute.xlu1 %1055 }
 0x379   :  { %1348 = vrsqrt.f32 %v857_v48 }
 0x37c   :  { %v1060_v4 = vpop.permute.xlu1 %1059 }
 0x37f   :  { %v1347_v23 = vpop.eup %1346 }
 0x380   :  { %v891_v61 = vmul.f32 %v1347_v23, %v1795_v53 }
 0x382   :  { %v911_v27 = vmul.f32 %v1612_v58, %v891_v61 }
 0x383   :  { %v1349_v5 = vpop.eup %1348 }
 0x384   :  { %v889_v28 = vmul.f32 %v1349_v5, %v1798_v22  ;;  %v931_v54 = vadd.f32 %v1614_v59, %v911_v27 }
 0x386   :  { %v909_v50 = vmul.f32 %v1612_v58, %v889_v28  ;;  %v947_v60 = vmax.f32 %v931_v54, 0.0 }
 0x388   :  { %v929_v52 = vadd.f32 %v1614_v59, %v909_v50  ;;  %v1170_v14 = vpack.c.bf16 %v947_v60, %v947_v60 }
 0x38a   :  { %v945_v55 = vmax.f32 %v929_v52, 0.0  ;;  %1028 = vst.msk [vmem:[%s2002_s6 + $0x3c] sm:$0xf] %vm1012_vm5, %v1170_v14 }
 0x38b   :  { %1093 = vst.msk [vmem:[%s2002_s6 + $0x3c] sm:$0xf] %vm1077_vm6, %v1060_v4 }
 0x38c   :  { %v1168_v53 = vpack.c.bf16 %v945_v55, %v945_v55 }
 0x38e   :  { %1026 = vst.msk [vmem:[%s2002_s6 + $0x34] sm:$0xf] %vm1012_vm5, %v1168_v53 }
 0x38f   :  { %1091 = vst.msk [vmem:[%s2002_s6 + $0x34] sm:$0xf] %vm1077_vm6, %v1056_v26 }

// kernel: explainer_forward.3
= control target key start
LH: loop header
LB: loop body
LE: loop exit
PB: predicated region body
PF: predicated region fallthrough
CT: control target
= control target key end

     0   :  { %vm34_vm0 = vcmask 293888   ;;  %v1687_v1 = vmov 0.0   ;;  %vm417_vm1 = vcmask 1041408   ;;  %vm718_vm2 = vcmask 261120   ;;  %s2180_s1 = inlined_call_operand.vmem [shape: bf16[128,36], index: 1, kind: input, shape index: {}, may-alias: {0,1}]   ;;  %s2181_s2 = inlined_call_operand.vmem [shape: bf16[128,128], index: 2, kind: input, shape index: {}]   ;;  %s2182_s4 = inlined_call_operand.vmem [shape: bf16[36,32], index: 4, kind: input, shape index: {}]   ;;  %s2183_s3 = inlined_call_operand.vmem [shape: bf16[36,32], index: 3, kind: input, shape index: {}]   ;;  %s2184_s0 = inlined_call_operand.vmem [shape: bf16[128,36], index: 0, kind: input, shape index: {}, may-alias: {0,1}]   ;;  %s2185_s5 = inlined_call_operand.vmem [shape: f32[3,32], index: 5, kind: input, shape index: {}]   ;;  %s2186_s6 = inlined_call_operand.vmem [shape: bf16[32,32], index: 6, kind: input, shape index: {}]   ;;  %s2187_s7 = inlined_call_operand.vmem [shape: f32[3,32], index: 7, kind: input, shape index: {}]   ;;  %s2188_s8 = inlined_call_operand.vmem [shape: f32[1,128], index: 8, kind: output, shape index: {}]  }
   0x1   :  { %v1619_v0 = vld [vmem:[%s2180_s1] sm:$0xff]   ;;  %37 = vst.msk [vmem:[#allocation2 + $0x10] sm:$0xff] %vm34_vm0, %v1687_v1  ;;  %35 = vst.msk [vmem:[#allocation2] sm:$0xff] %vm34_vm0, %v1687_v1  ;;  %v1620_v2 = vld [vmem:[%s2180_s1 + $0x8] sm:$0xff]   ;;  %vm1689_vm3 = vmmov 0  }
   0x2   :  { %36 = vst.msk [vmem:[#allocation2 + $0x8] sm:$0xff] %vm34_vm0, %v1687_v1  ;;  %38 = vst.msk [vmem:[#allocation2 + $0x18] sm:$0xff] %vm34_vm0, %v1687_v1  ;;  %1426 = vmatprep.subr.bf16.mxu0 %v1619_v0  ;;  %v1621_v3 = vld [vmem:[%s2180_s1 + $0x10] sm:$0xff]   ;;  %v1622_v4 = vld [vmem:[%s2180_s1 + $0x18] sm:$0xff]  }
   0x3   :  { %39 = vst.msk [vmem:[#allocation2 + $0x20] sm:$0xff] %vm34_vm0, %v1687_v1  ;;  %40 = vst.msk [vmem:[#allocation2 + $0x28] sm:$0xff] %vm34_vm0, %v1687_v1  ;;  %1427 = vmatpush3.bf16.msra.mxu0 %v1619_v0  ;;  %v1627_v5 = vld [vmem:[%s2181_s2] sm:$0xff]   ;;  %v1624_v7 = vld [vmem:[%s2180_s1 + $0x28] sm:$0xff]  }
   0x4   :  { %41 = vst.msk [vmem:[#allocation2 + $0x30] sm:$0xff] %vm34_vm0, %v1687_v1  ;;  %42 = vst.msk [vmem:[#allocation2 + $0x38] sm:$0xff] %vm34_vm0, %v1687_v1  ;;  %1428 = vmatprep.subr.bf16.mxu0 %v1620_v2  ;;  %1442 = vmatprep.mubr.bf16.mxu0 %v1627_v5  ;;  %v1623_v6 = vld [vmem:[%s2180_s1 + $0x20] sm:$0xff]   ;;  %v1625_v8 = vld [vmem:[%s2180_s1 + $0x30] sm:$0xff]  }
   0x5   :  { %43 = vst.msk [vmem:[#allocation2 + $0x40] sm:$0xff] %vm34_vm0, %v1687_v1  ;;  %44 = vst.msk [vmem:[#allocation2 + $0x48] sm:$0xff] %vm34_vm0, %v1687_v1  ;;  %v1626_v9 = vld [vmem:[%s2180_s1 + $0x38] sm:$0xff]   ;;  %v1628_v10 = vld [vmem:[%s2181_s2 + $0x8] sm:$0xff]  }
   0x6   :  { %45 = vst.msk [vmem:[#allocation2 + $0x50] sm:$0xff] %vm34_vm0, %v1687_v1  ;;  %46 = vst.msk [vmem:[#allocation2 + $0x58] sm:$0xff] %vm34_vm0, %v1687_v1  ;;  %v1629_v11 = vld [vmem:[%s2181_s2 + $0x10] sm:$0xff]   ;;  %v1630_v12 = vld [vmem:[%s2181_s2 + $0x18] sm:$0xff]  }
   0x7   :  { %47 = vst.msk [vmem:[#allocation2 + $0x60] sm:$0xff] %vm34_vm0, %v1687_v1  ;;  %48 = vst.msk [vmem:[#allocation2 + $0x68] sm:$0xff] %vm34_vm0, %v1687_v1  ;;  %1429 = vmatpush3.bf16.msra.mxu0 %v1620_v2  ;;  %v1631_v13 = vld [vmem:[%s2181_s2 + $0x20] sm:$0xff]   ;;  %v1632_v14 = vld [vmem:[%s2181_s2 + $0x28] sm:$0xff]  }
   0x8   :  { %49 = vst.msk [vmem:[#allocation2 + $0x70] sm:$0xff] %vm34_vm0, %v1687_v1  ;;  %50 = vst.msk [vmem:[#allocation2 + $0x78] sm:$0xff] %vm34_vm0, %v1687_v1  ;;  %1430 = vmatprep.subr.bf16.mxu0 %v1621_v3  ;;  %v1633_v15 = vld [vmem:[%s2181_s2 + $0x30] sm:$0xff]   ;;  %v1634_v16 = vld [vmem:[%s2181_s2 + $0x38] sm:$0xff]  }
   0x9   :  { %v1635_v17 = vld [vmem:[%s2182_s4] sm:$0xff]   ;;  %v1636_v18 = vld [vmem:[%s2182_s4 + $0x8] sm:$0xff]   ;;  %v1637_v19 = vld [vmem:[%s2182_s4 + $0x10] ss:$0 sps:$4 sm:$0x33]  }
   0xa   :  { %1589 = vmatprep.subr.bf16.mxu1 %v1635_v17  ;;  %v419_v20 = vsel %vm417_vm1, %v1637_v19, 0  ;;  %v1831_v21 = vld [vmem:[%s2183_s3] sm:$0xff]   ;;  %v53_v22 = vld [vmem:[#allocation2 + $0x10] sm:$0xff]  ;;  %v54_v25 = vld [vmem:[#allocation2 + $0x18] sm:$0xff] }
   0xb   :  { %1431 = vmatpush3.bf16.msra.mxu0 %v1621_v3  ;;  %1592 = vmatpush3.bf16.msra.mxu1 %v1635_v17  ;;  %v51_v23 = vld [vmem:[#allocation2] sm:$0xff]  ;;  %v52_v28 = vld [vmem:[#allocation2 + $0x8] sm:$0xff]  ;;  %v57_v34 = vld [vmem:[#allocation2 + $0x30] sm:$0xff] }
   0xc   :  { %1432 = vmatprep.subr.bf16.mxu0 %v1622_v4  ;;  %1590 = vmatprep.subr.bf16.mxu1 %v1636_v18  ;;  %v55_v35 = vld [vmem:[#allocation2 + $0x20] sm:$0xff]  ;;  %v58_v37 = vld [vmem:[#allocation2 + $0x38] sm:$0xff]  ;;  %v56_v40 = vld [vmem:[#allocation2 + $0x28] sm:$0xff] }
   0xd   :  { %v61_v49 = vld [vmem:[#allocation2 + $0x50] sm:$0xff]  ;;  %v59_v52 = vld [vmem:[#allocation2 + $0x40] sm:$0xff]  ;;  %v62_v55 = vld [vmem:[#allocation2 + $0x58] sm:$0xff] }
   0xe   :  { %v60_v58 = vld [vmem:[#allocation2 + $0x48] sm:$0xff]  ;;  %vm2148_vm4 = vmpackc.low %vm718_vm2, %vm718_vm2 }
   0xf   :  { %1433 = vmatpush3.bf16.msra.mxu0 %v1622_v4  ;;  %1593 = vmatpush3.bf16.msra.mxu1 %v1636_v18  ;;  %v65_v4 = vld [vmem:[#allocation2 + $0x70] sm:$0xff] }
  0x10   :  { %1434 = vmatprep.subr.bf16.mxu0 %v1623_v6  ;;  %1612 = vmatprep.subr.msk.bf16.mxu1 %vm417_vm1, %v1637_v19 }
  0x13   :  { %1435 = vmatpush3.bf16.msra.mxu0 %v1623_v6  ;;  %1594 = vmatpush3.bf16.msra.mxu1 %v419_v20 }
  0x14   :  { %1436 = vmatprep.subr.bf16.mxu0 %v1624_v7  ;;  %1480 = vmatprep.subr.bf16.mxu1 %v1831_v21 }
  0x17   :  { %1437 = vmatpush3.bf16.msra.mxu0 %v1624_v7  ;;  %v63_v7 = vld [vmem:[#allocation2 + $0x60] sm:$0xff] }
  0x18   :  { %1438 = vmatprep.subr.bf16.mxu0 %v1625_v8 }
  0x1b   :  { %1439 = vmatpush3.bf16.msra.mxu0 %v1625_v8 }
  0x1c   :  { %1440 = vmatprep.subr.bf16.mxu0 %v1626_v9 }
  0x1f   :  { %1441 = vmatpush3.bf16.msra.mxu0 %v1626_v9  ;;  %v1639_v9 = vld [vmem:[%s2183_s3 + $0x8] sm:$0xff]  }
  0x20   :  { %1458 = vmatprep.subr.bf16.mxu0 %v1635_v17 }
  0x22   :  { %1443 = vmatmul.mubr.bf16.vlgmr.msra.gmra.mrb[0].mxu0 %v1628_v10 }
  0x23   :  { %1446 = vmatprep.mubr.bf16.mxu0 %v1629_v11  ;;  %1459 = vmatpush3.bf16.msra.mxu0 %v1635_v17  ;;  %v66_v11 = vld [vmem:[#allocation2 + $0x78] sm:$0xff] }
  0x24   :  { %1460 = vmatprep.subr.bf16.mxu0 %v1636_v18 }
  0x27   :  { %1461 = vmatpush3.bf16.msra.mxu0 %v1636_v18 }
  0x28   :  { %1611 = vmatprep.subr.msk.bf16.mxu0 %vm417_vm1, %v1637_v19  ;;  %v1640_v19 = vld [vmem:[%s2183_s3 + $0x10] ss:$0 sps:$4 sm:$0x33]  }
  0x2a   :  { %1447 = vmatmul.mubr.bf16.gmra.mrb[4].mxu0 %v1630_v12 }
  0x2b   :  { %1450 = vmatprep.mubr.bf16.mxu0 %v1631_v13  ;;  %1463 = vmatpush3.bf16.msra.mxu0 %v419_v20 }
  0x32   :  { %1451 = vmatmul.mubr.bf16.gmra.mrb[8].mxu0 %v1632_v14  ;;  %v64_v14 = vld [vmem:[#allocation2 + $0x68] sm:$0xff] }
  0x33   :  { %1454 = vmatprep.mubr.bf16.mxu0 %v1633_v15 }
  0x3a   :  { %1455 = vmatmul.mubr.bf16.gmra.mrb[12].mxu0 %v1634_v16 }
  0xf5   :  { %v1444_v24 = vpop.f32.mrb[0].mxu0 }
  0xf6   :  { %v294_v26 = vadd.f32 %v1444_v24, %v53_v22  ;;  %v229_v27 = vpop.f32.mrb[1].mxu0 }
  0xf7   :  { %v292_v29 = vadd.f32 %v229_v27, %v51_v23  ;;  %v1445_v30 = vpop.f32.mrb[2].mxu0  ;;  %v599_v27 = vsel %vm417_vm1, %v1640_v19, 0 }
  0xf8   :  { %311 = vst.msk [vmem:[#allocation2 + $0x10] sm:$0xff] %vm34_vm0, %v294_v26  ;;  %v295_v31 = vadd.f32 %v1445_v30, %v54_v25  ;;  %v232_v32 = vpop.f32.mrb[3].mxu0 }
  0xf9   :  { %309 = vst.msk [vmem:[#allocation2] sm:$0xff] %vm34_vm0, %v292_v29  ;;  %v293_v33 = vadd.f32 %v232_v32, %v52_v28 }
  0xfa   :  { %312 = vst.msk [vmem:[#allocation2 + $0x18] sm:$0xff] %vm34_vm0, %v295_v31 }
  0xfb   :  { %310 = vst.msk [vmem:[#allocation2 + $0x8] sm:$0xff] %vm34_vm0, %v293_v33  ;;  %v1641_v33 = vld [vmem:[%s2184_s0] sm:$0xff]  }
  0xfd   :  { %v1448_v36 = vpop.f32.mrb[4].mxu0 }
  0xfe   :  { %v298_v38 = vadd.f32 %v1448_v36, %v57_v34  ;;  %v245_v39 = vpop.f32.mrb[5].mxu0  ;;  %v1643_v36 = vld [vmem:[%s2184_s0 + $0x10] sm:$0xff]  }
  0xff   :  { %v296_v41 = vadd.f32 %v245_v39, %v55_v35  ;;  %v1449_v42 = vpop.f32.mrb[6].mxu0  ;;  %v351_v51 = vld [vmem:[#allocation2 + $0x10] sm:$0xff]  ;;  %v1642_v35 = vld [vmem:[%s2184_s0 + $0x8] sm:$0xff]  }
 0x100   :  { %315 = vst.msk [vmem:[#allocation2 + $0x30] sm:$0xff] %vm34_vm0, %v298_v38  ;;  %v299_v43 = vadd.f32 %v1449_v42, %v58_v37  ;;  %v248_v44 = vpop.f32.mrb[7].mxu0  ;;  %v349_v47 = vld [vmem:[#allocation2] sm:$0xff]  ;;  %v1644_v37 = vld [vmem:[%s2184_s0 + $0x18] sm:$0xff]   ;;  %v1646_v39 = vld [vmem:[%s2184_s0 + $0x28] sm:$0xff]   ;;  %v698_v42 = vlaneseq }
 0x101   :  { %313 = vst.msk [vmem:[#allocation2 + $0x20] sm:$0xff] %vm34_vm0, %v296_v41  ;;  %v297_v45 = vadd.f32 %v248_v44, %v56_v40  ;;  %v352_v46 = vld [vmem:[#allocation2 + $0x18] sm:$0xff]  ;;  %v1645_v38 = vld [vmem:[%s2184_s0 + $0x20] sm:$0xff]   ;;  %v1647_v40 = vld [vmem:[%s2184_s0 + $0x30] sm:$0xff]  }
 0x102   :  { %316 = vst.msk [vmem:[#allocation2 + $0x38] sm:$0xff] %vm34_vm0, %v299_v43  ;;  %v350_v48 = vld [vmem:[#allocation2 + $0x8] sm:$0xff]  ;;  %v366_v53 = vpack.c.bf16 %v352_v46, %v351_v51  ;;  %v1648_v41 = vld [vmem:[%s2184_s0 + $0x38] sm:$0xff]   ;;  %v1899_v43 = vshrl.u32 %v698_v42, 7  ;;  %v518_v46 = vld [vmem:[%s2185_s5] sm:$0x7] }
 0x103   :  { %314 = vst.msk [vmem:[#allocation2 + $0x28] sm:$0xff] %vm34_vm0, %v297_v45  ;;  %v365_v50 = vpack.c.bf16 %v350_v48, %v349_v47 }
 0x104   :  { %v930_v44 = vsub.s32 1, %v1899_v43  ;;  %v950_v45 = vsub.s32 2, %v1899_v43 }
 0x105   :  { %v1452_v54 = vpop.f32.mrb[8].mxu0  ;;  %1464 = vmatprep.mubr.msk.bf16.mxu0 %vm34_vm0, %v365_v50 }
 0x106   :  { %v302_v56 = vadd.f32 %v1452_v54, %v61_v49  ;;  %v261_v57 = vpop.f32.mrb[9].mxu0  ;;  %1465 = vmatmul.mubr.msk.bf16.vlgmr.msra.gmra.mrb[16].mxu0 %vm34_vm0, %v366_v53  ;;  %v1906_v47 = vrot.slane %v518_v46, %v930_v44  ;;  %v1908_v48 = vrot.slane %v518_v46, %v950_v45  ;;  %v700_v53 = vsub.s32 0, %v1899_v43 }
 0x107   :  { %v300_v59 = vadd.f32 %v261_v57, %v59_v52  ;;  %v1453_v60 = vpop.f32.mrb[10].mxu0  ;;  %v355_v6 = vld [vmem:[#allocation2 + $0x30] sm:$0xff] }
 0x108   :  { %319 = vst.msk [vmem:[#allocation2 + $0x50] sm:$0xff] %vm34_vm0, %v302_v56  ;;  %v303_v61 = vadd.f32 %v1453_v60, %v62_v55  ;;  %v264_v62 = vpop.f32.mrb[11].mxu0  ;;  %v353_v2 = vld [vmem:[#allocation2 + $0x20] sm:$0xff]  ;;  %v701_v54 = vrot.slane %v518_v46, %v700_v53 }
 0x109   :  { %317 = vst.msk [vmem:[#allocation2 + $0x40] sm:$0xff] %vm34_vm0, %v300_v59  ;;  %v301_v63 = vadd.f32 %v264_v62, %v60_v58  ;;  %v356_v0 = vld [vmem:[#allocation2 + $0x38] sm:$0xff] }
 0x10a   :  { %320 = vst.msk [vmem:[#allocation2 + $0x58] sm:$0xff] %vm34_vm0, %v303_v61  ;;  %v354_v3 = vld [vmem:[#allocation2 + $0x28] sm:$0xff]  ;;  %v368_v8 = vpack.c.bf16 %v356_v0, %v355_v6 }
 0x10b   :  { %318 = vst.msk [vmem:[#allocation2 + $0x48] sm:$0xff] %vm34_vm0, %v301_v63  ;;  %v367_v5 = vpack.c.bf16 %v354_v3, %v353_v2 }
 0x10d   :  { %v1456_v10 = vpop.f32.mrb[12].mxu0  ;;  %1468 = vmatprep.mubr.msk.bf16.mxu1 %vm34_vm0, %v367_v5 }
 0x10e   :  { %v306_v12 = vadd.f32 %v1456_v10, %v65_v4  ;;  %v277_v13 = vpop.f32.mrb[13].mxu0  ;;  %1469 = vmatmul.mubr.msk.bf16.vlgmr.msra.gmra.mrb[0].mxu1 %vm34_vm0, %v368_v8 }
 0x10f   :  { %v304_v15 = vadd.f32 %v277_v13, %v63_v7  ;;  %1481 = vmatpush3.bf16.msra.mxu1 %v1831_v21  ;;  %v1457_v16 = vpop.f32.mrb[14].mxu0  ;;  %v359_v25 = vld [vmem:[#allocation2 + $0x50] sm:$0xff] }
 0x110   :  { %323 = vst.msk [vmem:[#allocation2 + $0x70] sm:$0xff] %vm34_vm0, %v306_v12  ;;  %v307_v17 = vadd.f32 %v1457_v16, %v66_v11  ;;  %v280_v18 = vpop.f32.mrb[15].mxu0  ;;  %1482 = vmatprep.subr.bf16.mxu1 %v1639_v9  ;;  %v357_v23 = vld [vmem:[#allocation2 + $0x40] sm:$0xff] }
 0x111   :  { %321 = vst.msk [vmem:[#allocation2 + $0x60] sm:$0xff] %vm34_vm0, %v304_v15  ;;  %v305_v20 = vadd.f32 %v280_v18, %v64_v14  ;;  %v360_v22 = vld [vmem:[#allocation2 + $0x58] sm:$0xff] }
 0x112   :  { %324 = vst.msk [vmem:[#allocation2 + $0x78] sm:$0xff] %vm34_vm0, %v307_v17  ;;  %v358_v24 = vld [vmem:[#allocation2 + $0x48] sm:$0xff]  ;;  %v370_v26 = vpack.c.bf16 %v360_v22, %v359_v25 }
 0x113   :  { %322 = vst.msk [vmem:[#allocation2 + $0x68] sm:$0xff] %vm34_vm0, %v305_v20  ;;  %v369_v21 = vpack.c.bf16 %v358_v24, %v357_v23  ;;  %1483 = vmatpush3.bf16.msra.mxu1 %v1639_v9 }
 0x114   :  { %1613 = vmatprep.subr.msk.bf16.mxu1 %vm417_vm1, %v1640_v19 }
 0x115   :  { %1472 = vmatprep.mubr.msk.bf16.mxu1 %vm34_vm0, %v369_v21 }
 0x116   :  { %1473 = vmatmul.mubr.msk.bf16.gmra.mrb[4].mxu1 %vm34_vm0, %v370_v26 }
 0x117   :  { %1485 = vmatpush3.bf16.msra.mxu1 %v599_v27  ;;  %v363_v32 = vld [vmem:[#allocation2 + $0x70] sm:$0xff] }
 0x118   :  { %v361_v29 = vld [vmem:[#allocation2 + $0x60] sm:$0xff] }
 0x119   :  { %v364_v28 = vld [vmem:[#allocation2 + $0x78] sm:$0xff] }
 0x11a   :  { %v362_v30 = vld [vmem:[#allocation2 + $0x68] sm:$0xff]  ;;  %v372_v34 = vpack.c.bf16 %v364_v28, %v363_v32 }
 0x11b   :  { %v371_v31 = vpack.c.bf16 %v362_v30, %v361_v29 }
 0x11d   :  { %1476 = vmatprep.mubr.msk.bf16.mxu1 %vm34_vm0, %v371_v31 }
 0x11e   :  { %1477 = vmatmul.mubr.msk.bf16.gmra.mrb[8].mxu1 %vm34_vm0, %v372_v34 }
 0x11f   :  { %1486 = vmatprep.mubr.msk.bf16.mxu1 %vm34_vm0, %v1641_v33 }
 0x126   :  { %1487 = vmatmul.mubr.msk.bf16.vlgmr.msra.gmra.mrb[12].mxu1 %vm34_vm0, %v1642_v35 }
 0x127   :  { %1490 = vmatprep.mubr.msk.bf16.mxu1 %vm34_vm0, %v1643_v36 }
 0x12e   :  { %1491 = vmatmul.mubr.msk.bf16.gmra.mrb[0].mxu1 %vm34_vm0, %v1644_v37 }
 0x12f   :  { %1494 = vmatprep.mubr.msk.bf16.mxu1 %vm34_vm0, %v1645_v38 }
 0x136   :  { %1495 = vmatmul.mubr.msk.bf16.gmra.mrb[4].mxu1 %vm34_vm0, %v1646_v39 }
 0x137   :  { %1498 = vmatprep.mubr.msk.bf16.mxu1 %vm34_vm0, %v1647_v40 }
 0x13e   :  { %1499 = vmatmul.mubr.msk.bf16.gmra.mrb[8].mxu1 %vm34_vm0, %v1648_v41 }
 0x13f   :  { %1554 = vmatprep.mubr.msk.f32.mxu1 %vm1689_vm3, %v1687_v1 }
 0x1d9   :  { %v1466_v49 = vpop.f32.mrb[16].mxu0 }
 0x1da   :  { %v455_v50 = vpop.f32.mrb[17].mxu0 }
 0x1db   :  { %v1467_v51 = vpop.f32.mrb[18].mxu0 }
 0x1dc   :  { %v458_v52 = vpop.f32.mrb[19].mxu0 }
 0x1f9   :  { %v1488_v55 = vpop.f32.mrb[12].mxu1 }
 0x1fa   :  { %v644_v56 = vadd.f32 %v1488_v55, %v1466_v49  ;;  %v635_v57 = vpop.f32.mrb[13].mxu1 }
 0x1fb   :  { %v636_v58 = vadd.f32 %v635_v57, %v455_v50  ;;  %v1489_v59 = vpop.f32.mrb[14].mxu1 }
 0x1fc   :  { %v647_v60 = vadd.f32 %v1489_v59, %v1467_v51  ;;  %v638_v61 = vpop.f32.mrb[15].mxu1  ;;  %v1913_v62 = vadd.f32 %v701_v54, %v644_v56 }
 0x1fd   :  { %v639_v63 = vadd.f32 %v638_v61, %v458_v52  ;;  %v1915_v0 = vadd.f32 %v701_v54, %v636_v58 }
 0x1fe   :  { %v725_v2 = vsel %vm718_vm2, %v1913_v62, 0.0  ;;  %v1919_v3 = vadd.f32 %v701_v54, %v647_v60 }
 0x1ff   :  { %726 = vadd.xlane.f32.xlu1 %v725_v2  ;;  %v719_v4 = vsel %vm718_vm2, %v1915_v0, 0.0  ;;  %v1923_v5 = vadd.f32 %v701_v54, %v639_v63 }
 0x200   :  { %720 = vadd.xlane.f32.xlu0 %v719_v4  ;;  %v728_v8 = vsel %vm718_vm2, %v1919_v3, 0.0 }
 0x201   :  { %v1492_v6 = vpop.f32.mrb[0].mxu1  ;;  %v722_v11 = vsel %vm718_vm2, %v1923_v5, 0.0 }
 0x202   :  { %v651_v7 = vpop.f32.mrb[1].mxu1  ;;  %v1933_v14 = vadd.f32 %v1492_v6, %v701_v54 }
 0x203   :  { %v1927_v9 = vadd.f32 %v701_v54, %v651_v7  ;;  %729 = vadd.xlane.f32.xlu1 %v728_v8  ;;  %v1493_v10 = vpop.f32.mrb[2].mxu1 }
 0x204   :  { %v654_v12 = vpop.f32.mrb[3].mxu1  ;;  %723 = vadd.xlane.f32.xlu0 %v722_v11  ;;  %v1935_v15 = vadd.f32 %v1493_v10, %v701_v54  ;;  %v737_v24 = vsel %vm718_vm2, %v1933_v14, 0.0 }
 0x205   :  { %v1931_v13 = vadd.f32 %v701_v54, %v654_v12  ;;  %v731_v17 = vsel %vm718_vm2, %v1927_v9, 0.0 }
 0x206   :  { %v740_v23 = vsel %vm718_vm2, %v1935_v15, 0.0 }
 0x207   :  { %v734_v16 = vsel %vm718_vm2, %v1931_v13, 0.0 }
 0x208   :  { %735 = vadd.xlane.f32.xlu1 %v734_v16  ;;  %732 = vadd.xlane.f32.xlu0 %v731_v17 }
 0x209   :  { %v1496_v18 = vpop.f32.mrb[4].mxu1 }
 0x20a   :  { %v667_v19 = vpop.f32.mrb[5].mxu1  ;;  %v1949_v26 = vadd.f32 %v1496_v18, %v701_v54 }
 0x20b   :  { %v1941_v20 = vadd.f32 %v701_v54, %v667_v19  ;;  %v1497_v22 = vpop.f32.mrb[6].mxu1 }
 0x20c   :  { %741 = vadd.xlane.f32.xlu1 %v740_v23  ;;  %v670_v21 = vpop.f32.mrb[7].mxu1  ;;  %738 = vadd.xlane.f32.xlu0 %v737_v24  ;;  %v1951_v27 = vadd.f32 %v1497_v22, %v701_v54  ;;  %v749_v35 = vsel %vm718_vm2, %v1949_v26, 0.0 }
 0x20d   :  { %v1947_v25 = vadd.f32 %v701_v54, %v670_v21  ;;  %v743_v29 = vsel %vm718_vm2, %v1941_v20, 0.0 }
 0x20e   :  { %v752_v34 = vsel %vm718_vm2, %v1951_v27, 0.0 }
 0x20f   :  { %v746_v28 = vsel %vm718_vm2, %v1947_v25, 0.0 }
 0x210   :  { %747 = vadd.xlane.f32.xlu1 %v746_v28  ;;  %744 = vadd.xlane.f32.xlu0 %v743_v29 }
 0x211   :  { %v1500_v30 = vpop.f32.mrb[8].mxu1 }
 0x212   :  { %v683_v31 = vpop.f32.mrb[9].mxu1  ;;  %v1965_v38 = vadd.f32 %v1500_v30, %v701_v54 }
 0x213   :  { %v1957_v32 = vadd.f32 %v701_v54, %v683_v31  ;;  %v1501_v33 = vpop.f32.mrb[10].mxu1 }
 0x214   :  { %753 = vadd.xlane.f32.xlu1 %v752_v34  ;;  %v686_v36 = vpop.f32.mrb[11].mxu1  ;;  %750 = vadd.xlane.f32.xlu0 %v749_v35  ;;  %v1967_v39 = vadd.f32 %v1501_v33, %v701_v54  ;;  %v761_v44 = vsel %vm718_vm2, %v1965_v38, 0.0 }
 0x215   :  { %v1963_v37 = vadd.f32 %v701_v54, %v686_v36  ;;  %v755_v41 = vsel %vm718_vm2, %v1957_v32, 0.0 }
 0x216   :  { %v764_v42 = vsel %vm718_vm2, %v1967_v39, 0.0 }
 0x217   :  { %v758_v40 = vsel %vm718_vm2, %v1963_v37, 0.0 }
 0x218   :  { %759 = vadd.xlane.f32.xlu1 %v758_v40  ;;  %756 = vadd.xlane.f32.xlu0 %v755_v41 }
 0x21c   :  { %765 = vadd.xlane.f32.xlu1 %v764_v42  ;;  %762 = vadd.xlane.f32.xlu0 %v761_v44 }
 0x28c   :  { %v727_v45 = vpop.xlane.xlu1 %726 }
 0x28d   :  { %v770_v46 = vmul.f32 0.03125, %v727_v45  ;;  %v721_v49 = vpop.xlane.xlu0 %720 }
 0x28e   :  { %v768_v50 = vmul.f32 0.03125, %v721_v49 }
 0x28f   :  { %v1978_v51 = vsub.f32 %v1913_v62, %v770_v46 }
 0x290   :  { %v1981_v52 = vsub.f32 %v1915_v0, %v768_v50  ;;  %v730_v54 = vpop.xlane.xlu1 %729 }
 0x291   :  { %v771_v55 = vmul.f32 0.03125, %v730_v54  ;;  %v724_v56 = vpop.xlane.xlu0 %723  ;;  %v802_v62 = vmul.f32 %v1978_v51, %v1978_v51 }
 0x292   :  { %v769_v57 = vmul.f32 0.03125, %v724_v56  ;;  %v800_v58 = vmul.f32 %v1981_v52, %v1981_v52 }
 0x293   :  { %v1986_v59 = vsub.f32 %v1919_v3, %v771_v55  ;;  %v822_v8 = vsel %vm718_vm2, %v802_v62, 0.0 }
 0x294   :  { %v1989_v60 = vsub.f32 %v1923_v5, %v769_v57  ;;  %v816_v61 = vsel %vm718_vm2, %v800_v58, 0.0 }
 0x295   :  { %v736_v63 = vpop.xlane.xlu1 %735  ;;  %817 = vadd.xlane.f32.xlu0 %v816_v61  ;;  %v733_v0 = vpop.xlane.xlu0 %732  ;;  %v803_v3 = vmul.f32 %v1986_v59, %v1986_v59 }
 0x296   :  { %v773_v2 = vmul.f32 0.03125, %v736_v63  ;;  %v772_v4 = vmul.f32 0.03125, %v733_v0  ;;  %v801_v6 = vmul.f32 %v1989_v60, %v1989_v60 }
 0x297   :  { %v825_v19 = vsel %vm718_vm2, %v803_v3, 0.0 }
 0x298   :  { %v1999_v7 = vsub.f32 %v1931_v13, %v773_v2  ;;  %v2002_v5 = vsub.f32 %v1927_v9, %v772_v4  ;;  %v819_v10 = vsel %vm718_vm2, %v801_v6, 0.0 }
 0x299   :  { %v742_v11 = vpop.xlane.xlu1 %741  ;;  %823 = vadd.xlane.f32.xlu0 %v822_v8  ;;  %820 = vadd.xlane.f32.xlu1 %v819_v10  ;;  %v739_v12 = vpop.xlane.xlu0 %738 }
 0x29a   :  { %v775_v16 = vmul.f32 0.03125, %v742_v11  ;;  %v774_v17 = vmul.f32 0.03125, %v739_v12  ;;  %v804_v18 = vmul.f32 %v2002_v5, %v2002_v5  ;;  %v805_v23 = vmul.f32 %v1999_v7, %v1999_v7 }
 0x29c   :  { %v2010_v13 = vsub.f32 %v1935_v15, %v775_v16  ;;  %v2013_v9 = vsub.f32 %v1933_v14, %v774_v17  ;;  %v828_v22 = vsel %vm718_vm2, %v804_v18, 0.0  ;;  %v831_v33 = vsel %vm718_vm2, %v805_v23, 0.0  ;;  %v1649_v16 = vld [vmem:[%s2186_s6] sm:$0xff]   ;;  %v1650_v17 = vld [vmem:[%s2186_s6 + $0x8] sm:$0xff]  }
 0x29d   :  { %v748_v24 = vpop.xlane.xlu1 %747  ;;  %826 = vadd.xlane.f32.xlu1 %v825_v19  ;;  %829 = vadd.xlane.f32.xlu0 %v828_v22  ;;  %v745_v21 = vpop.xlane.xlu0 %744 }
 0x29e   :  { %v777_v28 = vmul.f32 0.03125, %v748_v24  ;;  %v776_v29 = vmul.f32 0.03125, %v745_v21  ;;  %v806_v30 = vmul.f32 %v2013_v9, %v2013_v9  ;;  %v807_v15 = vmul.f32 %v2010_v13, %v2010_v13  ;;  %1502 = vmatprep.subr.bf16.mxu0 %v1649_v16 }
 0x29f   :  { %1503 = vmatpush3.bf16.msra.mxu0 %v1649_v16 }
 0x2a0   :  { %v2023_v14 = vsub.f32 %v1947_v25, %v777_v28  ;;  %v2026_v31 = vsub.f32 %v1941_v20, %v776_v29  ;;  %v834_v34 = vsel %vm718_vm2, %v806_v30, 0.0  ;;  %v837_v44 = vsel %vm718_vm2, %v807_v15, 0.0  ;;  %1504 = vmatprep.subr.bf16.mxu0 %v1650_v17 }
 0x2a1   :  { %v754_v35 = vpop.xlane.xlu1 %753  ;;  %832 = vadd.xlane.f32.xlu1 %v831_v33  ;;  %835 = vadd.xlane.f32.xlu0 %v834_v34  ;;  %v751_v36 = vpop.xlane.xlu0 %750 }
 0x2a2   :  { %v779_v40 = vmul.f32 0.03125, %v754_v35  ;;  %v778_v41 = vmul.f32 0.03125, %v751_v36  ;;  %v808_v42 = vmul.f32 %v2026_v31, %v2026_v31  ;;  %v809_v46 = vmul.f32 %v2023_v14, %v2023_v14 }
 0x2a3   :  { %1505 = vmatpush3.bf16.msra.mxu0 %v1650_v17 }
 0x2a4   :  { %v2034_v25 = vsub.f32 %v1951_v27, %v779_v40  ;;  %v2037_v20 = vsub.f32 %v1949_v26, %v778_v41  ;;  %v840_v45 = vsel %vm718_vm2, %v808_v42, 0.0  ;;  %v843_v58 = vsel %vm718_vm2, %v809_v46, 0.0 }
 0x2a5   :  { %v760_v49 = vpop.xlane.xlu1 %759  ;;  %838 = vadd.xlane.f32.xlu1 %v837_v44  ;;  %841 = vadd.xlane.f32.xlu0 %v840_v45  ;;  %v757_v50 = vpop.xlane.xlu0 %756 }
 0x2a6   :  { %v781_v54 = vmul.f32 0.03125, %v760_v49  ;;  %v780_v55 = vmul.f32 0.03125, %v757_v50  ;;  %v810_v56 = vmul.f32 %v2037_v20, %v2037_v20  ;;  %v811_v27 = vmul.f32 %v2034_v25, %v2034_v25 }
 0x2a8   :  { %v2047_v26 = vsub.f32 %v1963_v37, %v781_v54  ;;  %v2050_v57 = vsub.f32 %v1957_v32, %v780_v55  ;;  %v846_v61 = vsel %vm718_vm2, %v810_v56, 0.0  ;;  %v849_v6 = vsel %vm718_vm2, %v811_v27, 0.0 }
 0x2a9   :  { %v766_v62 = vpop.xlane.xlu1 %765  ;;  %844 = vadd.xlane.f32.xlu1 %v843_v58  ;;  %847 = vadd.xlane.f32.xlu0 %v846_v61  ;;  %v763_v63 = vpop.xlane.xlu0 %762 }
 0x2aa   :  { %v783_v0 = vmul.f32 0.03125, %v766_v62  ;;  %v782_v2 = vmul.f32 0.03125, %v763_v63  ;;  %v812_v4 = vmul.f32 %v2050_v57, %v2050_v57  ;;  %v813_v8 = vmul.f32 %v2047_v26, %v2047_v26 }
 0x2ac   :  { %v2058_v37 = vsub.f32 %v1967_v39, %v783_v0  ;;  %v2061_v32 = vsub.f32 %v1965_v38, %v782_v2  ;;  %v852_v3 = vsel %vm718_vm2, %v812_v4, 0.0  ;;  %v855_v11 = vsel %vm718_vm2, %v813_v8, 0.0 }
 0x2ad   :  { %850 = vadd.xlane.f32.xlu1 %v849_v6  ;;  %853 = vadd.xlane.f32.xlu0 %v852_v3 }
 0x2ae   :  { %v814_v10 = vmul.f32 %v2061_v32, %v2061_v32  ;;  %v815_v39 = vmul.f32 %v2058_v37, %v2058_v37 }
 0x2b0   :  { %v858_v12 = vsel %vm718_vm2, %v814_v10, 0.0  ;;  %v861_v38 = vsel %vm718_vm2, %v815_v39, 0.0 }
 0x2b1   :  { %856 = vadd.xlane.f32.xlu1 %v855_v11  ;;  %859 = vadd.xlane.f32.xlu0 %v858_v12 }
 0x2b5   :  { %862 = vadd.xlane.f32.xlu1 %v861_v38 }
 0x322   :  { %v818_v18 = vpop.xlane.xlu0 %817 }
 0x323   :  { %v864_v19 = vmul.f32 0.03125, %v818_v18 }
 0x325   :  { %v880_v22 = vadd.f32 1e-05, %v864_v19 }
 0x326   :  { %v821_v23 = vpop.xlane.xlu1 %820  ;;  %v824_v24 = vpop.xlane.xlu0 %823 }
 0x327   :  { %1651 = vrsqrt.f32 %v880_v22  ;;  %v865_v21 = vmul.f32 0.03125, %v821_v23  ;;  %v866_v28 = vmul.f32 0.03125, %v824_v24 }
 0x329   :  { %v881_v29 = vadd.f32 1e-05, %v865_v21  ;;  %v882_v30 = vadd.f32 1e-05, %v866_v28 }
 0x32a   :  { %v827_v15 = vpop.xlane.xlu1 %826  ;;  %v830_v33 = vpop.xlane.xlu0 %829 }
 0x32b   :  { %1653 = vrsqrt.f32 %v881_v29  ;;  %v867_v34 = vmul.f32 0.03125, %v827_v15  ;;  %v868_v35 = vmul.f32 0.03125, %v830_v33 }
 0x32c   :  { %1655 = vrsqrt.f32 %v882_v30 }
 0x32d   :  { %v883_v36 = vadd.f32 1e-05, %v867_v34  ;;  %v884_v40 = vadd.f32 1e-05, %v868_v35 }
 0x32e   :  { %v833_v41 = vpop.xlane.xlu1 %832  ;;  %v836_v42 = vpop.xlane.xlu0 %835 }
 0x32f   :  { %1657 = vrsqrt.f32 %v883_v36  ;;  %v869_v44 = vmul.f32 0.03125, %v833_v41  ;;  %v870_v45 = vmul.f32 0.03125, %v836_v42 }
 0x330   :  { %1659 = vrsqrt.f32 %v884_v40 }
 0x331   :  { %v1652_v46 = vpop.eup %1651  ;;  %v885_v49 = vadd.f32 1e-05, %v869_v44  ;;  %v886_v50 = vadd.f32 1e-05, %v870_v45 }
 0x332   :  { %v912_v54 = vmul.f32 %v1652_v46, %v1981_v52  ;;  %v839_v55 = vpop.xlane.xlu1 %838  ;;  %v842_v56 = vpop.xlane.xlu0 %841 }
 0x333   :  { %1661 = vrsqrt.f32 %v885_v49  ;;  %v871_v27 = vmul.f32 0.03125, %v839_v55  ;;  %v872_v58 = vmul.f32 0.03125, %v842_v56 }
 0x334   :  { %1663 = vrsqrt.f32 %v886_v50  ;;  %v932_v61 = vmul.f32 %v1906_v47, %v912_v54 }
 0x335   :  { %v1654_v62 = vpop.eup %1653  ;;  %v887_v63 = vadd.f32 1e-05, %v871_v27  ;;  %v888_v0 = vadd.f32 1e-05, %v872_v58 }
 0x336   :  { %v1656_v2 = vpop.eup %1655  ;;  %v913_v4 = vmul.f32 %v1654_v62, %v1989_v60  ;;  %v845_v6 = vpop.xlane.xlu1 %844  ;;  %v952_v8 = vadd.f32 %v1908_v48, %v932_v61 }
 0x337   :  { %v848_v3 = vpop.xlane.xlu0 %847  ;;  %v914_v52 = vmul.f32 %v1656_v2, %v1978_v51  ;;  %1665 = vrsqrt.f32 %v887_v63  ;;  %v873_v10 = vmul.f32 0.03125, %v845_v6 }
 0x338   :  { %v874_v11 = vmul.f32 0.03125, %v848_v3  ;;  %1667 = vrsqrt.f32 %v888_v0  ;;  %v933_v12 = vmul.f32 %v1906_v47, %v913_v4  ;;  %v968_v24 = vmax.f32 %v952_v8, 0.0 }
 0x339   :  { %v1658_v39 = vpop.eup %1657  ;;  %v934_v38 = vmul.f32 %v1906_v47, %v914_v52  ;;  %v889_v16 = vadd.f32 1e-05, %v873_v10 }
 0x33a   :  { %v890_v17 = vadd.f32 1e-05, %v874_v11  ;;  %v1660_v18 = vpop.eup %1659  ;;  %v915_v60 = vmul.f32 %v1658_v39, %v1986_v59  ;;  %v851_v19 = vpop.xlane.xlu1 %850  ;;  %v953_v23 = vadd.f32 %v1908_v48, %v933_v12 }
 0x33b   :  { %v854_v22 = vpop.xlane.xlu0 %853  ;;  %v916_v51 = vmul.f32 %v1660_v18, %v2002_v5  ;;  %1669 = vrsqrt.f32 %v889_v16  ;;  %v875_v21 = vmul.f32 0.03125, %v851_v19  ;;  %v954_v15 = vadd.f32 %v1908_v48, %v934_v38 }
 0x33c   :  { %v876_v28 = vmul.f32 0.03125, %v854_v22  ;;  %v935_v29 = vmul.f32 %v1906_v47, %v915_v60  ;;  %1671 = vrsqrt.f32 %v890_v17  ;;  %v969_v30 = vmax.f32 %v953_v23, 0.0 }
 0x33d   :  { %v1662_v33 = vpop.eup %1661  ;;  %v891_v34 = vadd.f32 1e-05, %v875_v21  ;;  %v936_v59 = vmul.f32 %v1906_v47, %v916_v51  ;;  %v970_v45 = vmax.f32 %v954_v15, 0.0 }
 0x33e   :  { %v892_v35 = vadd.f32 1e-05, %v876_v28  ;;  %v1664_v36 = vpop.eup %1663  ;;  %v917_v40 = vmul.f32 %v1662_v33, %v1999_v7  ;;  %v857_v41 = vpop.xlane.xlu1 %856  ;;  %v985_v5 = vpack.c.bf16 %v969_v30, %v968_v24  ;;  %v955_v44 = vadd.f32 %v1908_v48, %v935_v29 }
 0x33f   :  { %v860_v42 = vpop.xlane.xlu0 %859  ;;  %v918_v46 = vmul.f32 %v1664_v36, %v2013_v9  ;;  %1673 = vrsqrt.f32 %v891_v34  ;;  %v877_v49 = vmul.f32 0.03125, %v857_v41  ;;  %v956_v56 = vadd.f32 %v1908_v48, %v936_v59 }
 0x340   :  { %v878_v50 = vmul.f32 0.03125, %v860_v42  ;;  %1675 = vrsqrt.f32 %v892_v35  ;;  %1506 = vmatprep.mubr.msk.bf16.mxu0 %vm718_vm2, %v985_v5  ;;  %v971_v54 = vmax.f32 %v955_v44, 0.0  ;;  %v937_v55 = vmul.f32 %v1906_v47, %v917_v40 }
 0x341   :  { %v1666_v7 = vpop.eup %1665  ;;  %v893_v27 = vadd.f32 1e-05, %v877_v49  ;;  %v938_v61 = vmul.f32 %v1906_v47, %v918_v46  ;;  %v972_v8 = vmax.f32 %v956_v56, 0.0 }
 0x342   :  { %v894_v58 = vadd.f32 1e-05, %v878_v50  ;;  %v1668_v62 = vpop.eup %1667  ;;  %v919_v63 = vmul.f32 %v1666_v7, %v2010_v13  ;;  %v863_v9 = vpop.xlane.xlu1 %862  ;;  %v986_v0 = vpack.c.bf16 %v971_v54, %v970_v45  ;;  %v957_v2 = vadd.f32 %v1908_v48, %v937_v55 }
 0x343   :  { %v920_v4 = vmul.f32 %v1668_v62, %v2026_v31  ;;  %1677 = vrsqrt.f32 %v893_v27  ;;  %v879_v6 = vmul.f32 0.03125, %v863_v9  ;;  %v958_v3 = vadd.f32 %v1908_v48, %v938_v61 }
 0x344   :  { %1679 = vrsqrt.f32 %v894_v58  ;;  %1507 = vmatmul.mubr.msk.bf16.vlgmr.msra.gmra.mrb[20].mxu0 %vm718_vm2, %v986_v0  ;;  %v973_v52 = vmax.f32 %v957_v2, 0.0  ;;  %v939_v10 = vmul.f32 %v1906_v47, %v919_v63  ;;  %v1690_v63 = vmov 0  }
 0x345   :  { %v1670_v11 = vpop.eup %1669  ;;  %v895_v12 = vadd.f32 1e-05, %v879_v6  ;;  %v940_v13 = vmul.f32 %v1906_v47, %v920_v4  ;;  %v974_v60 = vmax.f32 %v958_v3, 0.0  ;;  %1618 = vset.pattern.permute.xlu0 %v1690_v63 }
 0x346   :  { %v1672_v39 = vpop.eup %1671  ;;  %v921_v38 = vmul.f32 %v1670_v11, %v2023_v14  ;;  %v987_v16 = vpack.c.bf16 %v973_v52, %v972_v8  ;;  %v959_v31 = vadd.f32 %v1908_v48, %v939_v10 }
 0x347   :  { %v922_v17 = vmul.f32 %v1672_v39, %v2037_v20  ;;  %1681 = vrsqrt.f32 %v895_v12  ;;  %v960_v18 = vadd.f32 %v1908_v48, %v940_v13 }
 0x348   :  { %1510 = vmatprep.mubr.msk.bf16.mxu0 %vm718_vm2, %v987_v16  ;;  %v975_v19 = vmax.f32 %v959_v31, 0.0  ;;  %v941_v22 = vmul.f32 %v1906_v47, %v921_v38 }
 0x349   :  { %v1674_v23 = vpop.eup %1673  ;;  %v942_v24 = vmul.f32 %v1906_v47, %v922_v17  ;;  %v976_v30 = vmax.f32 %v960_v18, 0.0 }
 0x34a   :  { %v1676_v51 = vpop.eup %1675  ;;  %v923_v14 = vmul.f32 %v1674_v23, %v2034_v25  ;;  %v988_v21 = vpack.c.bf16 %v975_v19, %v974_v60  ;;  %v961_v28 = vadd.f32 %v1908_v48, %v941_v22 }
 0x34b   :  { %v924_v20 = vmul.f32 %v1676_v51, %v2050_v57  ;;  %v962_v29 = vadd.f32 %v1908_v48, %v942_v24 }
 0x34c   :  { %1511 = vmatmul.mubr.msk.bf16.gmra.mrb[24].mxu0 %vm718_vm2, %v988_v21  ;;  %v977_v15 = vmax.f32 %v961_v28, 0.0  ;;  %v943_v33 = vmul.f32 %v1906_v47, %v923_v14 }
 0x34d   :  { %v1678_v34 = vpop.eup %1677  ;;  %v944_v35 = vmul.f32 %v1906_v47, %v924_v20  ;;  %v978_v42 = vmax.f32 %v962_v29, 0.0 }
 0x34e   :  { %v1680_v59 = vpop.eup %1679  ;;  %v925_v36 = vmul.f32 %v1678_v34, %v2047_v26  ;;  %v989_v25 = vpack.c.bf16 %v977_v15, %v976_v30  ;;  %v963_v40 = vadd.f32 %v1908_v48, %v943_v33 }
 0x34f   :  { %v926_v41 = vmul.f32 %v1680_v59, %v2061_v32  ;;  %v964_v57 = vadd.f32 %v1908_v48, %v944_v35 }
 0x350   :  { %1514 = vmatprep.mubr.msk.bf16.mxu0 %vm718_vm2, %v989_v25  ;;  %v979_v5 = vmax.f32 %v963_v40, 0.0  ;;  %v945_v44 = vmul.f32 %v1906_v47, %v925_v36 }
 0x351   :  { %v1682_v45 = vpop.eup %1681  ;;  %v946_v46 = vmul.f32 %v1906_v47, %v926_v41  ;;  %v980_v32 = vmax.f32 %v964_v57, 0.0 }
 0x352   :  { %v927_v49 = vmul.f32 %v1682_v45, %v2058_v37  ;;  %v990_v50 = vpack.c.bf16 %v979_v5, %v978_v42  ;;  %v965_v26 = vadd.f32 %v1908_v48, %v945_v44  ;;  %v1688_v37 = vmov 0.0|0.0  }
 0x353   :  { %v966_v54 = vadd.f32 %v1908_v48, %v946_v46  ;;  %1557 = vmatprep.subr.bf16.mxu1 %v1688_v37 }
 0x354   :  { %1515 = vmatmul.mubr.msk.bf16.gmra.mrb[28].mxu0 %vm718_vm2, %v990_v50  ;;  %v981_v55 = vmax.f32 %v965_v26, 0.0  ;;  %v947_v56 = vmul.f32 %v1906_v47, %v927_v49  ;;  %v2140_v47 = vld [vmem:[%s2187_s7] sm:$0x7] }
 0x355   :  { %v982_v58 = vmax.f32 %v966_v54, 0.0  ;;  %1152 = vperm.xlu0 %1618, %v2140_v47  }
 0x356   :  { %v991_v7 = vpack.c.bf16 %v981_v55, %v980_v32  ;;  %v967_v27 = vadd.f32 %v1908_v48, %v947_v56  ;;  %v1000_v48 = vrot.slane %v2140_v47, %v700_v53 }
 0x358   :  { %1518 = vmatprep.mubr.msk.bf16.mxu0 %vm718_vm2, %v991_v7  ;;  %v983_v61 = vmax.f32 %v967_v27, 0.0 }
 0x35a   :  { %v992_v62 = vpack.c.bf16 %v983_v61, %v982_v58  ;;  %v1154_v58 = vrot.slane %v2140_v47, 1 }
 0x35c   :  { %1519 = vmatmul.mubr.msk.bf16.gmra.mrb[32].mxu0 %vm718_vm2, %v992_v62 }
 0x3d4   :  { %v1153_v61 = vpop.permute.xlu0 %1152 }
 0x3d5   :  { %v1155_v62 = vrot.slane %v1153_v61, 2 }
 0x417   :  { %v1508_v9 = vpop.f32.mrb[20].mxu0 }
 0x418   :  { %v1080_v0 = vadd.f32 %v1508_v9, %v1000_v48  ;;  %v1071_v2 = vpop.f32.mrb[21].mxu0 }
 0x419   :  { %v1072_v4 = vadd.f32 %v1071_v2, %v1000_v48  ;;  %v1509_v6 = vpop.f32.mrb[22].mxu0 }
 0x41a   :  { %v1083_v3 = vadd.f32 %v1509_v6, %v1000_v48  ;;  %v1074_v1 = vpop.f32.mrb[23].mxu0  ;;  %v1136_v52 = vmax.f32 %v1080_v0, 0.0 }
 0x41b   :  { %v1075_v8 = vadd.f32 %v1074_v1, %v1000_v48  ;;  %v1134_v11 = vmax.f32 %v1072_v4, 0.0 }
 0x41c   :  { %v1137_v10 = vmax.f32 %v1083_v3, 0.0 }
 0x41d   :  { %v1135_v12 = vmax.f32 %v1075_v8, 0.0 }
 0x41e   :  { %v1562_v13 = vpack.c.bf16 %v1137_v10, %v1136_v52 }
 0x41f   :  { %v1558_v43 = vpack.c.bf16 %v1135_v12, %v1134_v11  ;;  %v1512_v53 = vpop.f32.mrb[24].mxu0 }
 0x420   :  { %v1096_v38 = vadd.f32 %v1512_v53, %v1000_v48  ;;  %v1087_v16 = vpop.f32.mrb[25].mxu0 }
 0x421   :  { %v1088_v31 = vadd.f32 %v1087_v16, %v1000_v48  ;;  %v1513_v17 = vpop.f32.mrb[26].mxu0  ;;  %1560 = vmatpush3.bf16.xpose.msk.msra.mxu1 %vm2148_vm4, %v1558_v43 }
 0x422   :  { %v1099_v18 = vadd.f32 %v1513_v17, %v1000_v48  ;;  %v1090_v60 = vpop.f32.mrb[27].mxu0  ;;  %1561 = vmatprep.subr.bf16.mxu1 %v1688_v37  ;;  %v1140_v22 = vmax.f32 %v1096_v38, 0.0 }
 0x423   :  { %v1091_v19 = vadd.f32 %v1090_v60, %v1000_v48  ;;  %v1138_v24 = vmax.f32 %v1088_v31, 0.0 }
 0x424   :  { %v1141_v23 = vmax.f32 %v1099_v18, 0.0 }
 0x425   :  { %v1139_v51 = vmax.f32 %v1091_v19, 0.0 }
 0x426   :  { %v1570_v14 = vpack.c.bf16 %v1141_v23, %v1140_v22 }
 0x427   :  { %v1566_v21 = vpack.c.bf16 %v1139_v51, %v1138_v24  ;;  %v1516_v28 = vpop.f32.mrb[28].mxu0 }
 0x428   :  { %v1112_v20 = vadd.f32 %v1516_v28, %v1000_v48  ;;  %v1103_v29 = vpop.f32.mrb[29].mxu0 }
 0x429   :  { %v1104_v30 = vadd.f32 %v1103_v29, %v1000_v48  ;;  %v1517_v15 = vpop.f32.mrb[30].mxu0  ;;  %1564 = vmatpush3.bf16.xpose.msk.msra.mxu1 %vm2148_vm4, %v1562_v13 }
 0x42a   :  { %v1115_v33 = vadd.f32 %v1517_v15, %v1000_v48  ;;  %v1106_v34 = vpop.f32.mrb[31].mxu0  ;;  %1565 = vmatprep.subr.bf16.mxu1 %v1688_v37  ;;  %v1144_v59 = vmax.f32 %v1112_v20, 0.0 }
 0x42b   :  { %v1107_v35 = vadd.f32 %v1106_v34, %v1000_v48  ;;  %v1142_v25 = vmax.f32 %v1104_v30, 0.0 }
 0x42c   :  { %v1145_v36 = vmax.f32 %v1115_v33, 0.0 }
 0x42d   :  { %v1143_v40 = vmax.f32 %v1107_v35, 0.0 }
 0x42e   :  { %v1578_v41 = vpack.c.bf16 %v1145_v36, %v1144_v59 }
 0x42f   :  { %v1574_v57 = vpack.c.bf16 %v1143_v40, %v1142_v25  ;;  %v1520_v42 = vpop.f32.mrb[32].mxu0 }
 0x430   :  { %v1128_v5 = vadd.f32 %v1520_v42, %v1000_v48  ;;  %v1119_v44 = vpop.f32.mrb[33].mxu0 }
 0x431   :  { %v1120_v45 = vadd.f32 %v1119_v44, %v1000_v48  ;;  %v1521_v46 = vpop.f32.mrb[34].mxu0  ;;  %1568 = vmatpush3.bf16.xpose.msk.msra.mxu1 %vm2148_vm4, %v1566_v21 }
 0x432   :  { %v1131_v49 = vadd.f32 %v1521_v46, %v1000_v48  ;;  %v1122_v50 = vpop.f32.mrb[35].mxu0  ;;  %1569 = vmatprep.subr.bf16.mxu1 %v1688_v37  ;;  %v1148_v54 = vmax.f32 %v1128_v5, 0.0 }
 0x433   :  { %v1123_v26 = vadd.f32 %v1122_v50, %v1000_v48  ;;  %v1146_v55 = vmax.f32 %v1120_v45, 0.0 }
 0x434   :  { %v1149_v32 = vmax.f32 %v1131_v49, 0.0 }
 0x435   :  { %v1147_v56 = vmax.f32 %v1123_v26, 0.0 }
 0x436   :  { %v1586_v7 = vpack.c.bf16 %v1149_v32, %v1148_v54 }
 0x437   :  { %v1582_v27 = vpack.c.bf16 %v1147_v56, %v1146_v55 }
 0x439   :  { %1572 = vmatpush3.bf16.xpose.msk.msra.mxu1 %vm2148_vm4, %v1570_v14 }
 0x43a   :  { %1573 = vmatprep.subr.bf16.mxu1 %v1688_v37 }
 0x441   :  { %1576 = vmatpush3.bf16.xpose.msk.msra.mxu1 %vm2148_vm4, %v1574_v57 }
 0x442   :  { %1577 = vmatprep.subr.bf16.mxu1 %v1688_v37 }
 0x449   :  { %1580 = vmatpush3.bf16.xpose.msk.msra.mxu1 %vm2148_vm4, %v1578_v41 }
 0x44a   :  { %1581 = vmatprep.subr.bf16.mxu1 %v1688_v37 }
 0x451   :  { %1584 = vmatpush3.bf16.xpose.msk.msra.mxu1 %vm2148_vm4, %v1582_v27 }
 0x452   :  { %1585 = vmatprep.subr.bf16.mxu1 %v1688_v37 }
 0x459   :  { %1588 = vmatpush3.bf16.xpose.msk.msra.mxu1 %vm2148_vm4, %v1586_v7 }
 0x460   :  { %1555 = vmatmul.mubr.msk.f32.vlgmr.msra.gmra.mrb[16].mxu1 %vm718_vm2, %v1154_v58 }
 0x533   :  { %v1273_v63 = vpop.f32.mrb[16].mxu1 }
 0x534   :  { %v1274_v48 = vadd.f32 %v1273_v63, %v1155_v62  ;;  %v1556_v9 = vpop.f32.mrb[17].mxu1 }
 0x536   :  { %v1277_v0 = vsub.f32 0.0, %v1274_v48 }
 0x538   :  { %v1278_v2 = vmul.f32 1.442695, %v1277_v0 }
 0x53a   :  { %1683 = vpow2.f32 %v1278_v2 }
 0x544   :  { %v1684_v4 = vpop.eup %1683 }
 0x545   :  { %v1280_v6 = vadd.f32 1.0, %v1684_v4 }
 0x547   :  { %1685 = vrcp.f32 %v1280_v6 }
 0x551   :  { %v1686_v3 = vpop.eup %1685 }
 0x552   :  { %v1282_v37 = vmin.f32 %v1686_v3, 1.0 }
 0x554   :  { %1283 = vst [vmem:[%s2188_s8] sm:$0x1] %v1282_v37 }

</bundles_post_ra>
